<compile_context>
chip_gen: v7x
topology: tpu7x:2x2x1
jax: 0.10.0
libtpu: 0.0.40
codegen_flags: <defaults>
</compile_context>

<pallas_src>
import math

import jax
import jax.numpy as jnp
from jax.experimental import pallas as pl
from jax.experimental.pallas import tpu as pltpu

# ------------------------- small synthetic BERT config -----------------------
HIDDEN = 32          # bert_model.config.hidden_size (small stand-in)
NUM_HEADS = 2
HEAD_DIM = HIDDEN // NUM_HEADS
INTERMEDIATE = 64
NUM_LAYERS = 2
VOCAB = 30           # ProtBERT-style tiny vocab
MAX_POS = 64
LN_EPS = 1e-12       # BERT LayerNorm eps

H_PAD = 128          # hidden padded to full lane width
I_PAD = 128          # intermediate padded to full lane width
QKV_PAD = 3 * H_PAD  # fused qkv projection width
SUBLANE = 8

PAD_ID, CLS_ID, SEP_ID = 0, 2, 3

WEIGHT_KEYS = ("head_mask", "emb_ln_g", "emb_ln_b",
               "wqkv", "bqkv", "wo", "bo",
               "ln1_g", "ln1_b", "w1", "b1", "w2", "b2", "ln2_g", "ln2_b")


def _round_up(n, m):
    return (n + m - 1) // m * m


# ------------------------------ kernel helpers --------------------------------
def _layer_norm_padded(x, gamma, beta):
    """LayerNorm over the real HIDDEN columns of a (S_PAD, H_PAD) tile.

    Invariant: padded columns of x are exactly zero, so plain sums equal sums
    over the real columns; E[x^2]-mu^2 keeps padded columns out of the
    variance.  gamma/beta are zero in padded columns, so padded output columns
    stay zero.
    """
    mu = jnp.sum(x, axis=-1, keepdims=True) * (1.0 / HIDDEN)
    ex2 = jnp.sum(x * x, axis=-1, keepdims=True) * (1.0 / HIDDEN)
    var = ex2 - mu * mu
    return (x - mu) * jax.lax.rsqrt(var + LN_EPS) * gamma + beta


def _gelu(x):
    # TODO(synk): prot_bert uses erf-GELU; tanh approximation is numerically
    # very close (weights here are synthetic anyway) and EUP-friendly.
    c = math.sqrt(2.0 / math.pi)
    return 0.5 * x * (1.0 + jnp.tanh(c * (x + 0.044715 * x * x * x)))


# ------------------------------- fused Pallas kernel ---------------------------
def fused_bert_kernel(x_ref, mask_ref, hm_ref, embg_ref, embb_ref,
                      wqkv_ref, bqkv_ref, wo_ref, bo_ref,
                      ln1g_ref, ln1b_ref,
                      w1_ref, b1_ref, w2_ref, b2_ref, ln2g_ref, ln2b_ref,
                      o_ref):
    """Embedding-LayerNorm + all encoder layers for one batch element."""
    x = x_ref[0]                        # (S_PAD, H_PAD), padded cols are zero
    add_mask = mask_ref[0]              # (1, S_PAD): 0 for real keys, -1e9 pad
    head_mask = hm_ref[...]             # (NUM_HEADS, H_PAD) 0/1 column selector

    # Embeddings LayerNorm.
    x = _layer_norm_padded(x, embg_ref[...], embb_ref[...])

    scale = 1.0 / math.sqrt(HEAD_DIM)
    for l in range(NUM_LAYERS):         # static unroll, weights stay resident
        # Fused QKV projection: one MXU push, lane-aligned slices afterwards.
        qkv = (jnp.dot(x, wqkv_ref[l], preferred_element_type=jnp.float32)
               + bqkv_ref[l])
        q = qkv[:, 0:H_PAD] * scale     # fold 1/sqrt(d) once (VPU)
        k = qkv[:, H_PAD:2 * H_PAD]
        v = qkv[:, 2 * H_PAD:3 * H_PAD]

        ctx = jnp.zeros_like(x)
        for h in range(NUM_HEADS):
            hm = head_mask[h][None, :]      # (1, H_PAD)
            kh = k * hm                     # zero other heads' columns (VPU)
            vh = v * hm
            # q . kh^T contracts only head-h columns (others are zero in kh).
            s = jax.lax.dot_general(q, kh, (((1,), (1,)), ((), ())),
                                    preferred_element_type=jnp.float32)
            s = s + add_mask
            s = s - jnp.max(s, axis=-1, keepdims=True)
            p = jnp.exp(s)
            p = p * pl.reciprocal(jnp.sum(p, axis=-1, keepdims=True), approx=True)
            ctx = ctx + jnp.dot(p, vh, preferred_element_type=jnp.float32)

        attn = jnp.dot(ctx, wo_ref[l], preferred_element_type=jnp.float32) + bo_ref[l]
        h1 = _layer_norm_padded(attn + x, ln1g_ref[l], ln1b_ref[l])

        ff = _gelu(jnp.dot(h1, w1_ref[l], preferred_element_type=jnp.float32)
                   + b1_ref[l])
        ff2 = jnp.dot(ff, w2_ref[l], preferred_element_type=jnp.float32) + b2_ref[l]
        x = _layer_norm_padded(ff2 + h1, ln2g_ref[l], ln2b_ref[l])

    o_ref[0] = x                        # lane-dense (S_PAD, 128) store


# ------------------------------- wrapper ---------------------------------------
def fused_bert_forward(x_emb, add_mask, params):
    B, S_pad, _ = x_emb.shape
    weights = [params[k] for k in WEIGHT_KEYS]

    def const_spec(shape):
        n = len(shape)
        return pl.BlockSpec(shape, lambda b, _n=n: (0,) * _n)

    in_specs = ([pl.BlockSpec((1, S_pad, H_PAD), lambda b: (b, 0, 0)),
                 pl.BlockSpec((1, 1, S_pad), lambda b: (b, 0, 0))]
                + [const_spec(w.shape) for w in weights])

    return pl.pallas_call(
        fused_bert_kernel,
        out_shape=jax.ShapeDtypeStruct((B, S_pad, H_PAD), jnp.float32),
        grid=(B,),
        in_specs=in_specs,
        out_specs=pl.BlockSpec((1, S_pad, H_PAD), lambda b: (b, 0, 0)),
        compiler_params=pltpu.CompilerParams(
            dimension_semantics=("parallel",)),
    )(x_emb, add_mask, *weights)


# ------------------------- deterministic parameter init -------------------------
def init_params(key):
    keys = iter(jax.random.split(key, 128))

    def dense(shape):
        return 0.02 * jax.random.normal(next(keys), shape, jnp.float32)

    def pad2(w, rows, cols):
        out = jnp.zeros((rows, cols), jnp.float32)
        return out.at[:w.shape[0], :w.shape[1]].set(w)

    def pad_bias(n_real, cols):
        b = dense((n_real,))
        out = jnp.zeros((1, cols), jnp.float32)
        return out.at[0, :n_real].set(b)

    ones_h = pad2(jnp.ones((1, HIDDEN), jnp.float32), 1, H_PAD)
    zeros_h = jnp.zeros((1, H_PAD), jnp.float32)

    head_mask = jnp.zeros((NUM_HEADS, H_PAD), jnp.float32)
    for h in range(NUM_HEADS):
        head_mask = head_mask.at[h, h * HEAD_DIM:(h + 1) * HEAD_DIM].set(1.0)

    params = {
        "word_emb": pad2(dense((VOCAB, HIDDEN)), VOCAB, H_PAD),
        "pos_emb": pad2(dense((MAX_POS, HIDDEN)), MAX_POS, H_PAD),
        "type_emb": pad2(dense((2, HIDDEN)), 2, H_PAD),
        "emb_ln_g": ones_h, "emb_ln_b": zeros_h,
        "head_mask": head_mask,
    }

    per_layer = {k: [] for k in ("wqkv", "bqkv", "wo", "bo",
                                 "ln1_g", "ln1_b", "w1", "b1", "w2", "b2",
                                 "ln2_g", "ln2_b")}
    for _ in range(NUM_LAYERS):
        wq = pad2(dense((HIDDEN, HIDDEN)), H_PAD, H_PAD)
        wk = pad2(dense((HIDDEN, HIDDEN)), H_PAD, H_PAD)
        wv = pad2(dense((HIDDEN, HIDDEN)), H_PAD, H_PAD)
        per_layer["wqkv"].append(jnp.concatenate([wq, wk, wv], axis=1))
        per_layer["bqkv"].append(jnp.concatenate(
            [pad_bias(HIDDEN, H_PAD) for _ in range(3)], axis=1))
        per_layer["wo"].append(pad2(dense((HIDDEN, HIDDEN)), H_PAD, H_PAD))
        per_layer["bo"].append(pad_bias(HIDDEN, H_PAD))
        per_layer["ln1_g"].append(ones_h)
        per_layer["ln1_b"].append(pad_bias(HIDDEN, H_PAD))
        per_layer["w1"].append(pad2(dense((HIDDEN, INTERMEDIATE)), H_PAD, I_PAD))
        per_layer["b1"].append(pad_bias(INTERMEDIATE, I_PAD))
        per_layer["w2"].append(pad2(dense((INTERMEDIATE, HIDDEN)), I_PAD, H_PAD))
        per_layer["b2"].append(pad_bias(HIDDEN, H_PAD))
        per_layer["ln2_g"].append(ones_h)
        per_layer["ln2_b"].append(pad_bias(HIDDEN, H_PAD))
    for k, v in per_layer.items():
        params[k] = jnp.stack(v)        # (NUM_LAYERS, ...)
    return params


# ------------------------------- forward (BertWrapModel) ------------------------
def bert_wrap_forward(input_ids, attention_mask, gather_idx, params):
    """BertWrapModel.forward: BERT encode, then concat
    last_hidden_state[i, 1:1+len_i] over the batch -> {'residue_feature': x}."""
    B, S_pad = input_ids.shape
    # Embeddings (gather done as XLA glue), already lane-padded to H_PAD.
    x = (params["word_emb"][input_ids]
         + params["pos_emb"][None, :S_pad, :]
         + params["type_emb"][0][None, None, :])
    # Additive attention mask (0 real / -1e9 padded), shape (B, 1, S_pad).
    add_mask = ((1.0 - attention_mask) * -1e9)[:, None, :].astype(jnp.float32)

    x = fused_bert_forward(x, add_mask, params)     # (B, S_pad, H_PAD)

    # Single flat gather for residue features; drop padded hidden columns.
    flat = x.reshape(B * S_pad, H_PAD)
    res = jnp.take(flat, gather_idx, axis=0)[:, :HIDDEN]
    return {"residue_feature": res}


# ------------------------------------- main -------------------------------------
if __name__ == "__main__":
    key = jax.random.PRNGKey(0)
    k_ids, k_params = jax.random.split(key)

    # TODO(synk): BertTokenizer / graph.to_sequence() are host-side string ops
    # with no Pallas equivalent; deterministic synthetic token ids used instead.
    lengths = [8, 6]                     # residue counts per sequence
    B = len(lengths)
    S = max(lengths) + 2                 # [CLS] + residues + [SEP]
    S_PAD = max(_round_up(S, SUBLANE), SUBLANE)

    seq_keys = jax.random.split(k_ids, B)
    rows, mrows = [], []
    for i, L in enumerate(lengths):
        aa = jax.random.randint(seq_keys[i], (L,), 5, 25, jnp.int32)  # amino acids
        row = jnp.concatenate([jnp.array([CLS_ID], jnp.int32), aa,
                               jnp.array([SEP_ID], jnp.int32),
                               jnp.full((S_PAD - L - 2,), PAD_ID, jnp.int32)])
        mrow = jnp.concatenate([jnp.ones((L + 2,), jnp.float32),
                                jnp.zeros((S_PAD - L - 2,), jnp.float32)])
        rows.append(row)
        mrows.append(mrow)
    input_ids = jnp.stack(rows)          # (B, S_PAD) int32
    attention_mask = jnp.stack(mrows)    # (B, S_PAD) float32

    params = init_params(k_params)       # deterministic synthetic "prot_bert"

    # Flat indices for residue_feature = concat_i x[i, 1:1+len_i].
    gather_idx = jnp.array(
        [i * S_PAD + 1 + j for i, L in enumerate(lengths) for j in range(L)],
        jnp.int32)

    fwd = jax.jit(bert_wrap_forward)
    out = fwd(input_ids, attention_mask, gather_idx, params)
    res = jax.block_until_ready(out["residue_feature"])
    assert res.shape == (sum(lengths), HIDDEN), res.shape
    assert bool(jnp.all(jnp.isfinite(res)))
    print("KERNEL_OK")
</pallas_src>

<mosaic_0001>
module attributes {stable_mosaic.version = 11 : i64} {
  func.func @fused_bert_kernel(%arg0: i32, %arg1: memref<1x16x128xf32, #tpu.memory_space<vmem>>, %arg2: memref<1x1x16xf32, #tpu.memory_space<vmem>>, %arg3: memref<2x128xf32, #tpu.memory_space<vmem>>, %arg4: memref<1x128xf32, #tpu.memory_space<vmem>>, %arg5: memref<1x128xf32, #tpu.memory_space<vmem>>, %arg6: memref<2x128x384xf32, #tpu.memory_space<vmem>>, %arg7: memref<2x1x384xf32, #tpu.memory_space<vmem>>, %arg8: memref<2x128x128xf32, #tpu.memory_space<vmem>>, %arg9: memref<2x1x128xf32, #tpu.memory_space<vmem>>, %arg10: memref<2x1x128xf32, #tpu.memory_space<vmem>>, %arg11: memref<2x1x128xf32, #tpu.memory_space<vmem>>, %arg12: memref<2x128x128xf32, #tpu.memory_space<vmem>>, %arg13: memref<2x1x128xf32, #tpu.memory_space<vmem>>, %arg14: memref<2x128x128xf32, #tpu.memory_space<vmem>>, %arg15: memref<2x1x128xf32, #tpu.memory_space<vmem>>, %arg16: memref<2x1x128xf32, #tpu.memory_space<vmem>>, %arg17: memref<2x1x128xf32, #tpu.memory_space<vmem>>, %arg18: memref<1x16x128xf32, #tpu.memory_space<vmem>>) attributes {dimension_semantics = [#tpu.dimension_semantics<parallel>], iteration_bounds = array<i64: 2>, scalar_prefetch = 0 : i64, scratch_operands = 0 : i64, tpu.core_type = #tpu.core_type<tc>, window_params = [{transform_indices = @transform_0, window_bounds = array<i64: 1, 16, 128>}, {transform_indices = @transform_1, window_bounds = array<i64: 1, 1, 16>}, {pipeline_mode = #tpu.pipeline_mode<synchronous>, transform_indices = @transform_2, window_bounds = array<i64: 2, 128>}, {pipeline_mode = #tpu.pipeline_mode<synchronous>, transform_indices = @transform_3, window_bounds = array<i64: 1, 128>}, {pipeline_mode = #tpu.pipeline_mode<synchronous>, transform_indices = @transform_4, window_bounds = array<i64: 1, 128>}, {pipeline_mode = #tpu.pipeline_mode<synchronous>, transform_indices = @transform_5, window_bounds = array<i64: 2, 128, 384>}, {pipeline_mode = #tpu.pipeline_mode<synchronous>, transform_indices = @transform_6, window_bounds = array<i64: 2, 1, 384>}, {pipeline_mode = #tpu.pipeline_mode<synchronous>, transform_indices = @transform_7, window_bounds = array<i64: 2, 128, 128>}, {pipeline_mode = #tpu.pipeline_mode<synchronous>, transform_indices = @transform_8, window_bounds = array<i64: 2, 1, 128>}, {pipeline_mode = #tpu.pipeline_mode<synchronous>, transform_indices = @transform_9, window_bounds = array<i64: 2, 1, 128>}, {pipeline_mode = #tpu.pipeline_mode<synchronous>, transform_indices = @transform_10, window_bounds = array<i64: 2, 1, 128>}, {pipeline_mode = #tpu.pipeline_mode<synchronous>, transform_indices = @transform_11, window_bounds = array<i64: 2, 128, 128>}, {pipeline_mode = #tpu.pipeline_mode<synchronous>, transform_indices = @transform_12, window_bounds = array<i64: 2, 1, 128>}, {pipeline_mode = #tpu.pipeline_mode<synchronous>, transform_indices = @transform_13, window_bounds = array<i64: 2, 128, 128>}, {pipeline_mode = #tpu.pipeline_mode<synchronous>, transform_indices = @transform_14, window_bounds = array<i64: 2, 1, 128>}, {pipeline_mode = #tpu.pipeline_mode<synchronous>, transform_indices = @transform_15, window_bounds = array<i64: 2, 1, 128>}, {pipeline_mode = #tpu.pipeline_mode<synchronous>, transform_indices = @transform_16, window_bounds = array<i64: 2, 1, 128>}, {transform_indices = @transform_17, window_bounds = array<i64: 1, 16, 128>}]} {
    %c0 = arith.constant 0 : index
    %c0_0 = arith.constant 0 : index
    %c0_1 = arith.constant 0 : index
    %0 = vector.load %arg1[%c0, %c0_0, %c0_1] : memref<1x16x128xf32, #tpu.memory_space<vmem>>, vector<1x16x128xf32>
    %1 = vector.shape_cast %0 : vector<1x16x128xf32> to vector<16x128xf32>
    %c0_2 = arith.constant 0 : index
    %c0_3 = arith.constant 0 : index
    %c0_4 = arith.constant 0 : index
    %2 = vector.load %arg2[%c0_2, %c0_3, %c0_4] : memref<1x1x16xf32, #tpu.memory_space<vmem>>, vector<1x1x16xf32>
    %3 = vector.shape_cast %2 : vector<1x1x16xf32> to vector<1x16xf32>
    %c0_5 = arith.constant 0 : index
    %c0_6 = arith.constant 0 : index
    %4 = vector.load %arg3[%c0_5, %c0_6] : memref<2x128xf32, #tpu.memory_space<vmem>>, vector<2x128xf32>
    %c0_7 = arith.constant 0 : index
    %c0_8 = arith.constant 0 : index
    %5 = vector.load %arg4[%c0_7, %c0_8] : memref<1x128xf32, #tpu.memory_space<vmem>>, vector<1x128xf32>
    %c0_9 = arith.constant 0 : index
    %c0_10 = arith.constant 0 : index
    %6 = vector.load %arg5[%c0_9, %c0_10] : memref<1x128xf32, #tpu.memory_space<vmem>>, vector<1x128xf32>
    %cst = arith.constant dense<0.000000e+00> : vector<16xf32>
    %7 = vector.multi_reduction <add>, %1, %cst [1] : vector<16x128xf32> to vector<16xf32>
    %8 = vector.shape_cast %7 : vector<16xf32> to vector<16x1xf32>
    %cst_11 = arith.constant 3.125000e-02 : f32
    %9 = vector.broadcast %cst_11 : f32 to vector<16x1xf32>
    %10 = arith.mulf %8, %9 : vector<16x1xf32>
    %11 = arith.mulf %1, %1 : vector<16x128xf32>
    %cst_12 = arith.constant dense<0.000000e+00> : vector<16xf32>
    %12 = vector.multi_reduction <add>, %11, %cst_12 [1] : vector<16x128xf32> to vector<16xf32>
    %13 = vector.shape_cast %12 : vector<16xf32> to vector<16x1xf32>
    %cst_13 = arith.constant 3.125000e-02 : f32
    %14 = vector.broadcast %cst_13 : f32 to vector<16x1xf32>
    %15 = arith.mulf %13, %14 : vector<16x1xf32>
    %16 = arith.mulf %10, %10 : vector<16x1xf32>
    %17 = arith.subf %15, %16 : vector<16x1xf32>
    %18 = vector.broadcast %10 : vector<16x1xf32> to vector<16x128xf32>
    %19 = arith.subf %1, %18 : vector<16x128xf32>
    %cst_14 = arith.constant 9.99999996E-13 : f32
    %20 = vector.broadcast %cst_14 : f32 to vector<16x1xf32>
    %21 = arith.addf %17, %20 : vector<16x1xf32>
    %22 = math.rsqrt %21 : vector<16x1xf32>
    %23 = vector.broadcast %22 : vector<16x1xf32> to vector<16x128xf32>
    %24 = arith.mulf %19, %23 : vector<16x128xf32>
    %25 = vector.broadcast %5 : vector<1x128xf32> to vector<16x128xf32>
    %26 = arith.mulf %24, %25 : vector<16x128xf32>
    %27 = vector.broadcast %6 : vector<1x128xf32> to vector<16x128xf32>
    %28 = arith.addf %26, %27 : vector<16x128xf32>
    %c0_15 = arith.constant 0 : index
    %c0_16 = arith.constant 0 : index
    %c0_17 = arith.constant 0 : index
    %29 = vector.load %arg6[%c0_15, %c0_16, %c0_17] : memref<2x128x384xf32, #tpu.memory_space<vmem>>, vector<1x128x384xf32>
    %30 = vector.shape_cast %29 : vector<1x128x384xf32> to vector<128x384xf32>
    %cst_18 = arith.constant dense<0.000000e+00> : vector<16x384xf32>
    %31 = tpu.matmul %28, %30, %cst_18 {dimension_numbers = #tpu.dot_dimension_numbers<[1], [0], [0], [1], [0, 0, 1, 1], [], []>} : vector<16x128xf32>, vector<128x384xf32>, vector<16x384xf32> -> vector<16x384xf32>
    %c0_19 = arith.constant 0 : index
    %c0_20 = arith.constant 0 : index
    %c0_21 = arith.constant 0 : index
    %32 = vector.load %arg7[%c0_19, %c0_20, %c0_21] : memref<2x1x384xf32, #tpu.memory_space<vmem>>, vector<1x1x384xf32>
    %33 = vector.shape_cast %32 : vector<1x1x384xf32> to vector<1x384xf32>
    %34 = vector.broadcast %33 : vector<1x384xf32> to vector<16x384xf32>
    %35 = arith.addf %31, %34 : vector<16x384xf32>
    %36 = vector.extract_strided_slice %35 {offsets = [0, 0], sizes = [16, 128], strides = [1, 1]} : vector<16x384xf32> to vector<16x128xf32>
    %cst_22 = arith.constant 2.500000e-01 : f32
    %37 = vector.broadcast %cst_22 : f32 to vector<16x128xf32>
    %38 = arith.mulf %36, %37 : vector<16x128xf32>
    %39 = vector.extract_strided_slice %35 {offsets = [0, 128], sizes = [16, 128], strides = [1, 1]} : vector<16x384xf32> to vector<16x128xf32>
    %40 = vector.extract_strided_slice %35 {offsets = [0, 256], sizes = [16, 128], strides = [1, 1]} : vector<16x384xf32> to vector<16x128xf32>
    %cst_23 = arith.constant 0.000000e+00 : f32
    %41 = vector.broadcast %cst_23 : f32 to vector<16x128xf32>
    %42 = vector.extract_strided_slice %4 {offsets = [0, 0], sizes = [1, 128], strides = [1, 1]} : vector<2x128xf32> to vector<1x128xf32>
    %43 = vector.shape_cast %42 : vector<1x128xf32> to vector<128xf32>
    %44 = vector.shape_cast %43 : vector<128xf32> to vector<1x128xf32>
    %45 = vector.broadcast %44 : vector<1x128xf32> to vector<16x128xf32>
    %46 = arith.mulf %39, %45 : vector<16x128xf32>
    %47 = vector.broadcast %44 : vector<1x128xf32> to vector<16x128xf32>
    %48 = arith.mulf %40, %47 : vector<16x128xf32>
    %cst_24 = arith.constant dense<0.000000e+00> : vector<16x16xf32>
    %49 = tpu.matmul %38, %46, %cst_24 {dimension_numbers = #tpu.dot_dimension_numbers<[1], [1], [0], [0], [0, 0, 1, 0], [], []>} : vector<16x128xf32>, vector<16x128xf32>, vector<16x16xf32> -> vector<16x16xf32>
    %50 = vector.broadcast %3 : vector<1x16xf32> to vector<16x16xf32>
    %51 = arith.addf %49, %50 : vector<16x16xf32>
    %cst_25 = arith.constant dense<0xFF800000> : vector<16xf32>
    %52 = vector.multi_reduction <maximumf>, %51, %cst_25 [1] : vector<16x16xf32> to vector<16xf32>
    %53 = vector.shape_cast %52 : vector<16xf32> to vector<16x1xf32>
    %54 = vector.broadcast %53 : vector<16x1xf32> to vector<16x16xf32>
    %55 = arith.subf %51, %54 : vector<16x16xf32>
    %56 = math.exp %55 : vector<16x16xf32>
    %cst_26 = arith.constant dense<0.000000e+00> : vector<16xf32>
    %57 = vector.multi_reduction <add>, %56, %cst_26 [1] : vector<16x16xf32> to vector<16xf32>
    %58 = vector.shape_cast %57 : vector<16xf32> to vector<16x1xf32>
    %59 = tpu.reciprocal %58 {approx = true} : vector<16x1xf32> -> vector<16x1xf32>
    %60 = vector.broadcast %59 : vector<16x1xf32> to vector<16x16xf32>
    %61 = arith.mulf %56, %60 : vector<16x16xf32>
    %cst_27 = arith.constant dense<0.000000e+00> : vector<16x128xf32>
    %62 = tpu.matmul %61, %48, %cst_27 {dimension_numbers = #tpu.dot_dimension_numbers<[1], [0], [0], [1], [0, 0, 1, 1], [], []>} : vector<16x16xf32>, vector<16x128xf32>, vector<16x128xf32> -> vector<16x128xf32>
    %63 = arith.addf %41, %62 : vector<16x128xf32>
    %64 = vector.extract_strided_slice %4 {offsets = [1, 0], sizes = [1, 128], strides = [1, 1]} : vector<2x128xf32> to vector<1x128xf32>
    %65 = vector.shape_cast %64 : vector<1x128xf32> to vector<128xf32>
    %66 = vector.shape_cast %65 : vector<128xf32> to vector<1x128xf32>
    %67 = vector.broadcast %66 : vector<1x128xf32> to vector<16x128xf32>
    %68 = arith.mulf %39, %67 : vector<16x128xf32>
    %69 = vector.broadcast %66 : vector<1x128xf32> to vector<16x128xf32>
    %70 = arith.mulf %40, %69 : vector<16x128xf32>
    %cst_28 = arith.constant dense<0.000000e+00> : vector<16x16xf32>
    %71 = tpu.matmul %38, %68, %cst_28 {dimension_numbers = #tpu.dot_dimension_numbers<[1], [1], [0], [0], [0, 0, 1, 0], [], []>} : vector<16x128xf32>, vector<16x128xf32>, vector<16x16xf32> -> vector<16x16xf32>
    %72 = vector.broadcast %3 : vector<1x16xf32> to vector<16x16xf32>
    %73 = arith.addf %71, %72 : vector<16x16xf32>
    %cst_29 = arith.constant dense<0xFF800000> : vector<16xf32>
    %74 = vector.multi_reduction <maximumf>, %73, %cst_29 [1] : vector<16x16xf32> to vector<16xf32>
    %75 = vector.shape_cast %74 : vector<16xf32> to vector<16x1xf32>
    %76 = vector.broadcast %75 : vector<16x1xf32> to vector<16x16xf32>
    %77 = arith.subf %73, %76 : vector<16x16xf32>
    %78 = math.exp %77 : vector<16x16xf32>
    %cst_30 = arith.constant dense<0.000000e+00> : vector<16xf32>
    %79 = vector.multi_reduction <add>, %78, %cst_30 [1] : vector<16x16xf32> to vector<16xf32>
    %80 = vector.shape_cast %79 : vector<16xf32> to vector<16x1xf32>
    %81 = tpu.reciprocal %80 {approx = true} : vector<16x1xf32> -> vector<16x1xf32>
    %82 = vector.broadcast %81 : vector<16x1xf32> to vector<16x16xf32>
    %83 = arith.mulf %78, %82 : vector<16x16xf32>
    %cst_31 = arith.constant dense<0.000000e+00> : vector<16x128xf32>
    %84 = tpu.matmul %83, %70, %cst_31 {dimension_numbers = #tpu.dot_dimension_numbers<[1], [0], [0], [1], [0, 0, 1, 1], [], []>} : vector<16x16xf32>, vector<16x128xf32>, vector<16x128xf32> -> vector<16x128xf32>
    %85 = arith.addf %63, %84 : vector<16x128xf32>
    %c0_32 = arith.constant 0 : index
    %c0_33 = arith.constant 0 : index
    %c0_34 = arith.constant 0 : index
    %86 = vector.load %arg8[%c0_32, %c0_33, %c0_34] : memref<2x128x128xf32, #tpu.memory_space<vmem>>, vector<1x128x128xf32>
    %87 = vector.shape_cast %86 : vector<1x128x128xf32> to vector<128x128xf32>
    %cst_35 = arith.constant dense<0.000000e+00> : vector<16x128xf32>
    %88 = tpu.matmul %85, %87, %cst_35 {dimension_numbers = #tpu.dot_dimension_numbers<[1], [0], [0], [1], [0, 0, 1, 1], [], []>} : vector<16x128xf32>, vector<128x128xf32>, vector<16x128xf32> -> vector<16x128xf32>
    %c0_36 = arith.constant 0 : index
    %c0_37 = arith.constant 0 : index
    %c0_38 = arith.constant 0 : index
    %89 = vector.load %arg9[%c0_36, %c0_37, %c0_38] : memref<2x1x128xf32, #tpu.memory_space<vmem>>, vector<1x1x128xf32>
    %90 = vector.shape_cast %89 : vector<1x1x128xf32> to vector<1x128xf32>
    %91 = vector.broadcast %90 : vector<1x128xf32> to vector<16x128xf32>
    %92 = arith.addf %88, %91 : vector<16x128xf32>
    %93 = arith.addf %92, %28 : vector<16x128xf32>
    %c0_39 = arith.constant 0 : index
    %c0_40 = arith.constant 0 : index
    %c0_41 = arith.constant 0 : index
    %94 = vector.load %arg10[%c0_39, %c0_40, %c0_41] : memref<2x1x128xf32, #tpu.memory_space<vmem>>, vector<1x1x128xf32>
    %95 = vector.shape_cast %94 : vector<1x1x128xf32> to vector<1x128xf32>
    %c0_42 = arith.constant 0 : index
    %c0_43 = arith.constant 0 : index
    %c0_44 = arith.constant 0 : index
    %96 = vector.load %arg11[%c0_42, %c0_43, %c0_44] : memref<2x1x128xf32, #tpu.memory_space<vmem>>, vector<1x1x128xf32>
    %97 = vector.shape_cast %96 : vector<1x1x128xf32> to vector<1x128xf32>
    %cst_45 = arith.constant dense<0.000000e+00> : vector<16xf32>
    %98 = vector.multi_reduction <add>, %93, %cst_45 [1] : vector<16x128xf32> to vector<16xf32>
    %99 = vector.shape_cast %98 : vector<16xf32> to vector<16x1xf32>
    %cst_46 = arith.constant 3.125000e-02 : f32
    %100 = vector.broadcast %cst_46 : f32 to vector<16x1xf32>
    %101 = arith.mulf %99, %100 : vector<16x1xf32>
    %102 = arith.mulf %93, %93 : vector<16x128xf32>
    %cst_47 = arith.constant dense<0.000000e+00> : vector<16xf32>
    %103 = vector.multi_reduction <add>, %102, %cst_47 [1] : vector<16x128xf32> to vector<16xf32>
    %104 = vector.shape_cast %103 : vector<16xf32> to vector<16x1xf32>
    %cst_48 = arith.constant 3.125000e-02 : f32
    %105 = vector.broadcast %cst_48 : f32 to vector<16x1xf32>
    %106 = arith.mulf %104, %105 : vector<16x1xf32>
    %107 = arith.mulf %101, %101 : vector<16x1xf32>
    %108 = arith.subf %106, %107 : vector<16x1xf32>
    %109 = vector.broadcast %101 : vector<16x1xf32> to vector<16x128xf32>
    %110 = arith.subf %93, %109 : vector<16x128xf32>
    %cst_49 = arith.constant 9.99999996E-13 : f32
    %111 = vector.broadcast %cst_49 : f32 to vector<16x1xf32>
    %112 = arith.addf %108, %111 : vector<16x1xf32>
    %113 = math.rsqrt %112 : vector<16x1xf32>
    %114 = vector.broadcast %113 : vector<16x1xf32> to vector<16x128xf32>
    %115 = arith.mulf %110, %114 : vector<16x128xf32>
    %116 = vector.broadcast %95 : vector<1x128xf32> to vector<16x128xf32>
    %117 = arith.mulf %115, %116 : vector<16x128xf32>
    %118 = vector.broadcast %97 : vector<1x128xf32> to vector<16x128xf32>
    %119 = arith.addf %117, %118 : vector<16x128xf32>
    %c0_50 = arith.constant 0 : index
    %c0_51 = arith.constant 0 : index
    %c0_52 = arith.constant 0 : index
    %120 = vector.load %arg12[%c0_50, %c0_51, %c0_52] : memref<2x128x128xf32, #tpu.memory_space<vmem>>, vector<1x128x128xf32>
    %121 = vector.shape_cast %120 : vector<1x128x128xf32> to vector<128x128xf32>
    %cst_53 = arith.constant dense<0.000000e+00> : vector<16x128xf32>
    %122 = tpu.matmul %119, %121, %cst_53 {dimension_numbers = #tpu.dot_dimension_numbers<[1], [0], [0], [1], [0, 0, 1, 1], [], []>} : vector<16x128xf32>, vector<128x128xf32>, vector<16x128xf32> -> vector<16x128xf32>
    %c0_54 = arith.constant 0 : index
    %c0_55 = arith.constant 0 : index
    %c0_56 = arith.constant 0 : index
    %123 = vector.load %arg13[%c0_54, %c0_55, %c0_56] : memref<2x1x128xf32, #tpu.memory_space<vmem>>, vector<1x1x128xf32>
    %124 = vector.shape_cast %123 : vector<1x1x128xf32> to vector<1x128xf32>
    %125 = vector.broadcast %124 : vector<1x128xf32> to vector<16x128xf32>
    %126 = arith.addf %122, %125 : vector<16x128xf32>
    %cst_57 = arith.constant 5.000000e-01 : f32
    %127 = vector.broadcast %cst_57 : f32 to vector<16x128xf32>
    %128 = arith.mulf %127, %126 : vector<16x128xf32>
    %cst_58 = arith.constant 4.471500e-02 : f32
    %129 = vector.broadcast %cst_58 : f32 to vector<16x128xf32>
    %130 = arith.mulf %129, %126 : vector<16x128xf32>
    %131 = arith.mulf %130, %126 : vector<16x128xf32>
    %132 = arith.mulf %131, %126 : vector<16x128xf32>
    %133 = arith.addf %126, %132 : vector<16x128xf32>
    %cst_59 = arith.constant 0.797884583 : f32
    %134 = vector.broadcast %cst_59 : f32 to vector<16x128xf32>
    %135 = arith.mulf %134, %133 : vector<16x128xf32>
    %136 = math.tanh %135 : vector<16x128xf32>
    %cst_60 = arith.constant 1.000000e+00 : f32
    %137 = vector.broadcast %cst_60 : f32 to vector<16x128xf32>
    %138 = arith.addf %137, %136 : vector<16x128xf32>
    %139 = arith.mulf %128, %138 : vector<16x128xf32>
    %c0_61 = arith.constant 0 : index
    %c0_62 = arith.constant 0 : index
    %c0_63 = arith.constant 0 : index
    %140 = vector.load %arg14[%c0_61, %c0_62, %c0_63] : memref<2x128x128xf32, #tpu.memory_space<vmem>>, vector<1x128x128xf32>
    %141 = vector.shape_cast %140 : vector<1x128x128xf32> to vector<128x128xf32>
    %cst_64 = arith.constant dense<0.000000e+00> : vector<16x128xf32>
    %142 = tpu.matmul %139, %141, %cst_64 {dimension_numbers = #tpu.dot_dimension_numbers<[1], [0], [0], [1], [0, 0, 1, 1], [], []>} : vector<16x128xf32>, vector<128x128xf32>, vector<16x128xf32> -> vector<16x128xf32>
    %c0_65 = arith.constant 0 : index
    %c0_66 = arith.constant 0 : index
    %c0_67 = arith.constant 0 : index
    %143 = vector.load %arg15[%c0_65, %c0_66, %c0_67] : memref<2x1x128xf32, #tpu.memory_space<vmem>>, vector<1x1x128xf32>
    %144 = vector.shape_cast %143 : vector<1x1x128xf32> to vector<1x128xf32>
    %145 = vector.broadcast %144 : vector<1x128xf32> to vector<16x128xf32>
    %146 = arith.addf %142, %145 : vector<16x128xf32>
    %147 = arith.addf %146, %119 : vector<16x128xf32>
    %c0_68 = arith.constant 0 : index
    %c0_69 = arith.constant 0 : index
    %c0_70 = arith.constant 0 : index
    %148 = vector.load %arg16[%c0_68, %c0_69, %c0_70] : memref<2x1x128xf32, #tpu.memory_space<vmem>>, vector<1x1x128xf32>
    %149 = vector.shape_cast %148 : vector<1x1x128xf32> to vector<1x128xf32>
    %c0_71 = arith.constant 0 : index
    %c0_72 = arith.constant 0 : index
    %c0_73 = arith.constant 0 : index
    %150 = vector.load %arg17[%c0_71, %c0_72, %c0_73] : memref<2x1x128xf32, #tpu.memory_space<vmem>>, vector<1x1x128xf32>
    %151 = vector.shape_cast %150 : vector<1x1x128xf32> to vector<1x128xf32>
    %cst_74 = arith.constant dense<0.000000e+00> : vector<16xf32>
    %152 = vector.multi_reduction <add>, %147, %cst_74 [1] : vector<16x128xf32> to vector<16xf32>
    %153 = vector.shape_cast %152 : vector<16xf32> to vector<16x1xf32>
    %cst_75 = arith.constant 3.125000e-02 : f32
    %154 = vector.broadcast %cst_75 : f32 to vector<16x1xf32>
    %155 = arith.mulf %153, %154 : vector<16x1xf32>
    %156 = arith.mulf %147, %147 : vector<16x128xf32>
    %cst_76 = arith.constant dense<0.000000e+00> : vector<16xf32>
    %157 = vector.multi_reduction <add>, %156, %cst_76 [1] : vector<16x128xf32> to vector<16xf32>
    %158 = vector.shape_cast %157 : vector<16xf32> to vector<16x1xf32>
    %cst_77 = arith.constant 3.125000e-02 : f32
    %159 = vector.broadcast %cst_77 : f32 to vector<16x1xf32>
    %160 = arith.mulf %158, %159 : vector<16x1xf32>
    %161 = arith.mulf %155, %155 : vector<16x1xf32>
    %162 = arith.subf %160, %161 : vector<16x1xf32>
    %163 = vector.broadcast %155 : vector<16x1xf32> to vector<16x128xf32>
    %164 = arith.subf %147, %163 : vector<16x128xf32>
    %cst_78 = arith.constant 9.99999996E-13 : f32
    %165 = vector.broadcast %cst_78 : f32 to vector<16x1xf32>
    %166 = arith.addf %162, %165 : vector<16x1xf32>
    %167 = math.rsqrt %166 : vector<16x1xf32>
    %168 = vector.broadcast %167 : vector<16x1xf32> to vector<16x128xf32>
    %169 = arith.mulf %164, %168 : vector<16x128xf32>
    %170 = vector.broadcast %149 : vector<1x128xf32> to vector<16x128xf32>
    %171 = arith.mulf %169, %170 : vector<16x128xf32>
    %172 = vector.broadcast %151 : vector<1x128xf32> to vector<16x128xf32>
    %173 = arith.addf %171, %172 : vector<16x128xf32>
    %c1 = arith.constant 1 : index
    %c0_79 = arith.constant 0 : index
    %c0_80 = arith.constant 0 : index
    %174 = vector.load %arg6[%c1, %c0_79, %c0_80] : memref<2x128x384xf32, #tpu.memory_space<vmem>>, vector<1x128x384xf32>
    %175 = vector.shape_cast %174 : vector<1x128x384xf32> to vector<128x384xf32>
    %cst_81 = arith.constant dense<0.000000e+00> : vector<16x384xf32>
    %176 = tpu.matmul %173, %175, %cst_81 {dimension_numbers = #tpu.dot_dimension_numbers<[1], [0], [0], [1], [0, 0, 1, 1], [], []>} : vector<16x128xf32>, vector<128x384xf32>, vector<16x384xf32> -> vector<16x384xf32>
    %c1_82 = arith.constant 1 : index
    %c0_83 = arith.constant 0 : index
    %c0_84 = arith.constant 0 : index
    %177 = vector.load %arg7[%c1_82, %c0_83, %c0_84] : memref<2x1x384xf32, #tpu.memory_space<vmem>>, vector<1x1x384xf32>
    %178 = vector.shape_cast %177 : vector<1x1x384xf32> to vector<1x384xf32>
    %179 = vector.broadcast %178 : vector<1x384xf32> to vector<16x384xf32>
    %180 = arith.addf %176, %179 : vector<16x384xf32>
    %181 = vector.extract_strided_slice %180 {offsets = [0, 0], sizes = [16, 128], strides = [1, 1]} : vector<16x384xf32> to vector<16x128xf32>
    %cst_85 = arith.constant 2.500000e-01 : f32
    %182 = vector.broadcast %cst_85 : f32 to vector<16x128xf32>
    %183 = arith.mulf %181, %182 : vector<16x128xf32>
    %184 = vector.extract_strided_slice %180 {offsets = [0, 128], sizes = [16, 128], strides = [1, 1]} : vector<16x384xf32> to vector<16x128xf32>
    %185 = vector.extract_strided_slice %180 {offsets = [0, 256], sizes = [16, 128], strides = [1, 1]} : vector<16x384xf32> to vector<16x128xf32>
    %cst_86 = arith.constant 0.000000e+00 : f32
    %186 = vector.broadcast %cst_86 : f32 to vector<16x128xf32>
    %187 = vector.extract_strided_slice %4 {offsets = [0, 0], sizes = [1, 128], strides = [1, 1]} : vector<2x128xf32> to vector<1x128xf32>
    %188 = vector.shape_cast %187 : vector<1x128xf32> to vector<128xf32>
    %189 = vector.shape_cast %188 : vector<128xf32> to vector<1x128xf32>
    %190 = vector.broadcast %189 : vector<1x128xf32> to vector<16x128xf32>
    %191 = arith.mulf %184, %190 : vector<16x128xf32>
    %192 = vector.broadcast %189 : vector<1x128xf32> to vector<16x128xf32>
    %193 = arith.mulf %185, %192 : vector<16x128xf32>
    %cst_87 = arith.constant dense<0.000000e+00> : vector<16x16xf32>
    %194 = tpu.matmul %183, %191, %cst_87 {dimension_numbers = #tpu.dot_dimension_numbers<[1], [1], [0], [0], [0, 0, 1, 0], [], []>} : vector<16x128xf32>, vector<16x128xf32>, vector<16x16xf32> -> vector<16x16xf32>
    %195 = vector.broadcast %3 : vector<1x16xf32> to vector<16x16xf32>
    %196 = arith.addf %194, %195 : vector<16x16xf32>
    %cst_88 = arith.constant dense<0xFF800000> : vector<16xf32>
    %197 = vector.multi_reduction <maximumf>, %196, %cst_88 [1] : vector<16x16xf32> to vector<16xf32>
    %198 = vector.shape_cast %197 : vector<16xf32> to vector<16x1xf32>
    %199 = vector.broadcast %198 : vector<16x1xf32> to vector<16x16xf32>
    %200 = arith.subf %196, %199 : vector<16x16xf32>
    %201 = math.exp %200 : vector<16x16xf32>
    %cst_89 = arith.constant dense<0.000000e+00> : vector<16xf32>
    %202 = vector.multi_reduction <add>, %201, %cst_89 [1] : vector<16x16xf32> to vector<16xf32>
    %203 = vector.shape_cast %202 : vector<16xf32> to vector<16x1xf32>
    %204 = tpu.reciprocal %203 {approx = true} : vector<16x1xf32> -> vector<16x1xf32>
    %205 = vector.broadcast %204 : vector<16x1xf32> to vector<16x16xf32>
    %206 = arith.mulf %201, %205 : vector<16x16xf32>
    %cst_90 = arith.constant dense<0.000000e+00> : vector<16x128xf32>
    %207 = tpu.matmul %206, %193, %cst_90 {dimension_numbers = #tpu.dot_dimension_numbers<[1], [0], [0], [1], [0, 0, 1, 1], [], []>} : vector<16x16xf32>, vector<16x128xf32>, vector<16x128xf32> -> vector<16x128xf32>
    %208 = arith.addf %186, %207 : vector<16x128xf32>
    %209 = vector.extract_strided_slice %4 {offsets = [1, 0], sizes = [1, 128], strides = [1, 1]} : vector<2x128xf32> to vector<1x128xf32>
    %210 = vector.shape_cast %209 : vector<1x128xf32> to vector<128xf32>
    %211 = vector.shape_cast %210 : vector<128xf32> to vector<1x128xf32>
    %212 = vector.broadcast %211 : vector<1x128xf32> to vector<16x128xf32>
    %213 = arith.mulf %184, %212 : vector<16x128xf32>
    %214 = vector.broadcast %211 : vector<1x128xf32> to vector<16x128xf32>
    %215 = arith.mulf %185, %214 : vector<16x128xf32>
    %cst_91 = arith.constant dense<0.000000e+00> : vector<16x16xf32>
    %216 = tpu.matmul %183, %213, %cst_91 {dimension_numbers = #tpu.dot_dimension_numbers<[1], [1], [0], [0], [0, 0, 1, 0], [], []>} : vector<16x128xf32>, vector<16x128xf32>, vector<16x16xf32> -> vector<16x16xf32>
    %217 = vector.broadcast %3 : vector<1x16xf32> to vector<16x16xf32>
    %218 = arith.addf %216, %217 : vector<16x16xf32>
    %cst_92 = arith.constant dense<0xFF800000> : vector<16xf32>
    %219 = vector.multi_reduction <maximumf>, %218, %cst_92 [1] : vector<16x16xf32> to vector<16xf32>
    %220 = vector.shape_cast %219 : vector<16xf32> to vector<16x1xf32>
    %221 = vector.broadcast %220 : vector<16x1xf32> to vector<16x16xf32>
    %222 = arith.subf %218, %221 : vector<16x16xf32>
    %223 = math.exp %222 : vector<16x16xf32>
    %cst_93 = arith.constant dense<0.000000e+00> : vector<16xf32>
    %224 = vector.multi_reduction <add>, %223, %cst_93 [1] : vector<16x16xf32> to vector<16xf32>
    %225 = vector.shape_cast %224 : vector<16xf32> to vector<16x1xf32>
    %226 = tpu.reciprocal %225 {approx = true} : vector<16x1xf32> -> vector<16x1xf32>
    %227 = vector.broadcast %226 : vector<16x1xf32> to vector<16x16xf32>
    %228 = arith.mulf %223, %227 : vector<16x16xf32>
    %cst_94 = arith.constant dense<0.000000e+00> : vector<16x128xf32>
    %229 = tpu.matmul %228, %215, %cst_94 {dimension_numbers = #tpu.dot_dimension_numbers<[1], [0], [0], [1], [0, 0, 1, 1], [], []>} : vector<16x16xf32>, vector<16x128xf32>, vector<16x128xf32> -> vector<16x128xf32>
    %230 = arith.addf %208, %229 : vector<16x128xf32>
    %c1_95 = arith.constant 1 : index
    %c0_96 = arith.constant 0 : index
    %c0_97 = arith.constant 0 : index
    %231 = vector.load %arg8[%c1_95, %c0_96, %c0_97] : memref<2x128x128xf32, #tpu.memory_space<vmem>>, vector<1x128x128xf32>
    %232 = vector.shape_cast %231 : vector<1x128x128xf32> to vector<128x128xf32>
    %cst_98 = arith.constant dense<0.000000e+00> : vector<16x128xf32>
    %233 = tpu.matmul %230, %232, %cst_98 {dimension_numbers = #tpu.dot_dimension_numbers<[1], [0], [0], [1], [0, 0, 1, 1], [], []>} : vector<16x128xf32>, vector<128x128xf32>, vector<16x128xf32> -> vector<16x128xf32>
    %c1_99 = arith.constant 1 : index
    %c0_100 = arith.constant 0 : index
    %c0_101 = arith.constant 0 : index
    %234 = vector.load %arg9[%c1_99, %c0_100, %c0_101] : memref<2x1x128xf32, #tpu.memory_space<vmem>>, vector<1x1x128xf32>
    %235 = vector.shape_cast %234 : vector<1x1x128xf32> to vector<1x128xf32>
    %236 = vector.broadcast %235 : vector<1x128xf32> to vector<16x128xf32>
    %237 = arith.addf %233, %236 : vector<16x128xf32>
    %238 = arith.addf %237, %173 : vector<16x128xf32>
    %c1_102 = arith.constant 1 : index
    %c0_103 = arith.constant 0 : index
    %c0_104 = arith.constant 0 : index
    %239 = vector.load %arg10[%c1_102, %c0_103, %c0_104] : memref<2x1x128xf32, #tpu.memory_space<vmem>>, vector<1x1x128xf32>
    %240 = vector.shape_cast %239 : vector<1x1x128xf32> to vector<1x128xf32>
    %c1_105 = arith.constant 1 : index
    %c0_106 = arith.constant 0 : index
    %c0_107 = arith.constant 0 : index
    %241 = vector.load %arg11[%c1_105, %c0_106, %c0_107] : memref<2x1x128xf32, #tpu.memory_space<vmem>>, vector<1x1x128xf32>
    %242 = vector.shape_cast %241 : vector<1x1x128xf32> to vector<1x128xf32>
    %cst_108 = arith.constant dense<0.000000e+00> : vector<16xf32>
    %243 = vector.multi_reduction <add>, %238, %cst_108 [1] : vector<16x128xf32> to vector<16xf32>
    %244 = vector.shape_cast %243 : vector<16xf32> to vector<16x1xf32>
    %cst_109 = arith.constant 3.125000e-02 : f32
    %245 = vector.broadcast %cst_109 : f32 to vector<16x1xf32>
    %246 = arith.mulf %244, %245 : vector<16x1xf32>
    %247 = arith.mulf %238, %238 : vector<16x128xf32>
    %cst_110 = arith.constant dense<0.000000e+00> : vector<16xf32>
    %248 = vector.multi_reduction <add>, %247, %cst_110 [1] : vector<16x128xf32> to vector<16xf32>
    %249 = vector.shape_cast %248 : vector<16xf32> to vector<16x1xf32>
    %cst_111 = arith.constant 3.125000e-02 : f32
    %250 = vector.broadcast %cst_111 : f32 to vector<16x1xf32>
    %251 = arith.mulf %249, %250 : vector<16x1xf32>
    %252 = arith.mulf %246, %246 : vector<16x1xf32>
    %253 = arith.subf %251, %252 : vector<16x1xf32>
    %254 = vector.broadcast %246 : vector<16x1xf32> to vector<16x128xf32>
    %255 = arith.subf %238, %254 : vector<16x128xf32>
    %cst_112 = arith.constant 9.99999996E-13 : f32
    %256 = vector.broadcast %cst_112 : f32 to vector<16x1xf32>
    %257 = arith.addf %253, %256 : vector<16x1xf32>
    %258 = math.rsqrt %257 : vector<16x1xf32>
    %259 = vector.broadcast %258 : vector<16x1xf32> to vector<16x128xf32>
    %260 = arith.mulf %255, %259 : vector<16x128xf32>
    %261 = vector.broadcast %240 : vector<1x128xf32> to vector<16x128xf32>
    %262 = arith.mulf %260, %261 : vector<16x128xf32>
    %263 = vector.broadcast %242 : vector<1x128xf32> to vector<16x128xf32>
    %264 = arith.addf %262, %263 : vector<16x128xf32>
    %c1_113 = arith.constant 1 : index
    %c0_114 = arith.constant 0 : index
    %c0_115 = arith.constant 0 : index
    %265 = vector.load %arg12[%c1_113, %c0_114, %c0_115] : memref<2x128x128xf32, #tpu.memory_space<vmem>>, vector<1x128x128xf32>
    %266 = vector.shape_cast %265 : vector<1x128x128xf32> to vector<128x128xf32>
    %cst_116 = arith.constant dense<0.000000e+00> : vector<16x128xf32>
    %267 = tpu.matmul %264, %266, %cst_116 {dimension_numbers = #tpu.dot_dimension_numbers<[1], [0], [0], [1], [0, 0, 1, 1], [], []>} : vector<16x128xf32>, vector<128x128xf32>, vector<16x128xf32> -> vector<16x128xf32>
    %c1_117 = arith.constant 1 : index
    %c0_118 = arith.constant 0 : index
    %c0_119 = arith.constant 0 : index
    %268 = vector.load %arg13[%c1_117, %c0_118, %c0_119] : memref<2x1x128xf32, #tpu.memory_space<vmem>>, vector<1x1x128xf32>
    %269 = vector.shape_cast %268 : vector<1x1x128xf32> to vector<1x128xf32>
    %270 = vector.broadcast %269 : vector<1x128xf32> to vector<16x128xf32>
    %271 = arith.addf %267, %270 : vector<16x128xf32>
    %cst_120 = arith.constant 5.000000e-01 : f32
    %272 = vector.broadcast %cst_120 : f32 to vector<16x128xf32>
    %273 = arith.mulf %272, %271 : vector<16x128xf32>
    %cst_121 = arith.constant 4.471500e-02 : f32
    %274 = vector.broadcast %cst_121 : f32 to vector<16x128xf32>
    %275 = arith.mulf %274, %271 : vector<16x128xf32>
    %276 = arith.mulf %275, %271 : vector<16x128xf32>
    %277 = arith.mulf %276, %271 : vector<16x128xf32>
    %278 = arith.addf %271, %277 : vector<16x128xf32>
    %cst_122 = arith.constant 0.797884583 : f32
    %279 = vector.broadcast %cst_122 : f32 to vector<16x128xf32>
    %280 = arith.mulf %279, %278 : vector<16x128xf32>
    %281 = math.tanh %280 : vector<16x128xf32>
    %cst_123 = arith.constant 1.000000e+00 : f32
    %282 = vector.broadcast %cst_123 : f32 to vector<16x128xf32>
    %283 = arith.addf %282, %281 : vector<16x128xf32>
    %284 = arith.mulf %273, %283 : vector<16x128xf32>
    %c1_124 = arith.constant 1 : index
    %c0_125 = arith.constant 0 : index
    %c0_126 = arith.constant 0 : index
    %285 = vector.load %arg14[%c1_124, %c0_125, %c0_126] : memref<2x128x128xf32, #tpu.memory_space<vmem>>, vector<1x128x128xf32>
    %286 = vector.shape_cast %285 : vector<1x128x128xf32> to vector<128x128xf32>
    %cst_127 = arith.constant dense<0.000000e+00> : vector<16x128xf32>
    %287 = tpu.matmul %284, %286, %cst_127 {dimension_numbers = #tpu.dot_dimension_numbers<[1], [0], [0], [1], [0, 0, 1, 1], [], []>} : vector<16x128xf32>, vector<128x128xf32>, vector<16x128xf32> -> vector<16x128xf32>
    %c1_128 = arith.constant 1 : index
    %c0_129 = arith.constant 0 : index
    %c0_130 = arith.constant 0 : index
    %288 = vector.load %arg15[%c1_128, %c0_129, %c0_130] : memref<2x1x128xf32, #tpu.memory_space<vmem>>, vector<1x1x128xf32>
    %289 = vector.shape_cast %288 : vector<1x1x128xf32> to vector<1x128xf32>
    %290 = vector.broadcast %289 : vector<1x128xf32> to vector<16x128xf32>
    %291 = arith.addf %287, %290 : vector<16x128xf32>
    %292 = arith.addf %291, %264 : vector<16x128xf32>
    %c1_131 = arith.constant 1 : index
    %c0_132 = arith.constant 0 : index
    %c0_133 = arith.constant 0 : index
    %293 = vector.load %arg16[%c1_131, %c0_132, %c0_133] : memref<2x1x128xf32, #tpu.memory_space<vmem>>, vector<1x1x128xf32>
    %294 = vector.shape_cast %293 : vector<1x1x128xf32> to vector<1x128xf32>
    %c1_134 = arith.constant 1 : index
    %c0_135 = arith.constant 0 : index
    %c0_136 = arith.constant 0 : index
    %295 = vector.load %arg17[%c1_134, %c0_135, %c0_136] : memref<2x1x128xf32, #tpu.memory_space<vmem>>, vector<1x1x128xf32>
    %296 = vector.shape_cast %295 : vector<1x1x128xf32> to vector<1x128xf32>
    %cst_137 = arith.constant dense<0.000000e+00> : vector<16xf32>
    %297 = vector.multi_reduction <add>, %292, %cst_137 [1] : vector<16x128xf32> to vector<16xf32>
    %298 = vector.shape_cast %297 : vector<16xf32> to vector<16x1xf32>
    %cst_138 = arith.constant 3.125000e-02 : f32
    %299 = vector.broadcast %cst_138 : f32 to vector<16x1xf32>
    %300 = arith.mulf %298, %299 : vector<16x1xf32>
    %301 = arith.mulf %292, %292 : vector<16x128xf32>
    %cst_139 = arith.constant dense<0.000000e+00> : vector<16xf32>
    %302 = vector.multi_reduction <add>, %301, %cst_139 [1] : vector<16x128xf32> to vector<16xf32>
    %303 = vector.shape_cast %302 : vector<16xf32> to vector<16x1xf32>
    %cst_140 = arith.constant 3.125000e-02 : f32
    %304 = vector.broadcast %cst_140 : f32 to vector<16x1xf32>
    %305 = arith.mulf %303, %304 : vector<16x1xf32>
    %306 = arith.mulf %300, %300 : vector<16x1xf32>
    %307 = arith.subf %305, %306 : vector<16x1xf32>
    %308 = vector.broadcast %300 : vector<16x1xf32> to vector<16x128xf32>
    %309 = arith.subf %292, %308 : vector<16x128xf32>
    %cst_141 = arith.constant 9.99999996E-13 : f32
    %310 = vector.broadcast %cst_141 : f32 to vector<16x1xf32>
    %311 = arith.addf %307, %310 : vector<16x1xf32>
    %312 = math.rsqrt %311 : vector<16x1xf32>
    %313 = vector.broadcast %312 : vector<16x1xf32> to vector<16x128xf32>
    %314 = arith.mulf %309, %313 : vector<16x128xf32>
    %315 = vector.broadcast %294 : vector<1x128xf32> to vector<16x128xf32>
    %316 = arith.mulf %314, %315 : vector<16x128xf32>
    %317 = vector.broadcast %296 : vector<1x128xf32> to vector<16x128xf32>
    %318 = arith.addf %316, %317 : vector<16x128xf32>
    %c0_142 = arith.constant 0 : index
    %c0_143 = arith.constant 0 : index
    %c0_144 = arith.constant 0 : index
    %319 = vector.load %arg18[%c0_142, %c0_143, %c0_144] : memref<1x16x128xf32, #tpu.memory_space<vmem>>, vector<1x16x128xf32>
    %320 = vector.shape_cast %319 : vector<1x16x128xf32> to vector<16x128xf32>
    %321 = vector.shape_cast %318 : vector<16x128xf32> to vector<1x16x128xf32>
    tpu.vector_store %arg18[%c0_142, %c0_143, %c0_144], %321 {strides = array<i32>} : memref<1x16x128xf32, #tpu.memory_space<vmem>>, vector<1x16x128xf32>,
    return
  }
  func.func @transform_0(%arg0: i32) -> (i32, i32, i32) {
    %c0_i32 = arith.constant 0 : i32
    %c0_i32_0 = arith.constant 0 : i32
    %c0_i32_1 = arith.constant 0 : i32
    return %arg0, %c0_i32, %c0_i32_0 : i32, i32, i32
  }
  func.func @transform_1(%arg0: i32) -> (i32, i32, i32) {
    %c0_i32 = arith.constant 0 : i32
    %c0_i32_0 = arith.constant 0 : i32
    %c0_i32_1 = arith.constant 0 : i32
    return %arg0, %c0_i32, %c0_i32_0 : i32, i32, i32
  }
  func.func @transform_2(%arg0: i32) -> (i32, i32) {
    %c0_i32 = arith.constant 0 : i32
    %c0_i32_0 = arith.constant 0 : i32
    %c0_i32_1 = arith.constant 0 : i32
    return %c0_i32, %c0_i32_0 : i32, i32
  }
  func.func @transform_3(%arg0: i32) -> (i32, i32) {
    %c0_i32 = arith.constant 0 : i32
    %c0_i32_0 = arith.constant 0 : i32
    %c0_i32_1 = arith.constant 0 : i32
    return %c0_i32, %c0_i32_0 : i32, i32
  }
  func.func @transform_4(%arg0: i32) -> (i32, i32) {
    %c0_i32 = arith.constant 0 : i32
    %c0_i32_0 = arith.constant 0 : i32
    %c0_i32_1 = arith.constant 0 : i32
    return %c0_i32, %c0_i32_0 : i32, i32
  }
  func.func @transform_5(%arg0: i32) -> (i32, i32, i32) {
    %c0_i32 = arith.constant 0 : i32
    %c0_i32_0 = arith.constant 0 : i32
    %c0_i32_1 = arith.constant 0 : i32
    %c0_i32_2 = arith.constant 0 : i32
    return %c0_i32, %c0_i32_0, %c0_i32_1 : i32, i32, i32
  }
  func.func @transform_6(%arg0: i32) -> (i32, i32, i32) {
    %c0_i32 = arith.constant 0 : i32
    %c0_i32_0 = arith.constant 0 : i32
    %c0_i32_1 = arith.constant 0 : i32
    %c0_i32_2 = arith.constant 0 : i32
    return %c0_i32, %c0_i32_0, %c0_i32_1 : i32, i32, i32
  }
  func.func @transform_7(%arg0: i32) -> (i32, i32, i32) {
    %c0_i32 = arith.constant 0 : i32
    %c0_i32_0 = arith.constant 0 : i32
    %c0_i32_1 = arith.constant 0 : i32
    %c0_i32_2 = arith.constant 0 : i32
    return %c0_i32, %c0_i32_0, %c0_i32_1 : i32, i32, i32
  }
  func.func @transform_8(%arg0: i32) -> (i32, i32, i32) {
    %c0_i32 = arith.constant 0 : i32
    %c0_i32_0 = arith.constant 0 : i32
    %c0_i32_1 = arith.constant 0 : i32
    %c0_i32_2 = arith.constant 0 : i32
    return %c0_i32, %c0_i32_0, %c0_i32_1 : i32, i32, i32
  }
  func.func @transform_9(%arg0: i32) -> (i32, i32, i32) {
    %c0_i32 = arith.constant 0 : i32
    %c0_i32_0 = arith.constant 0 : i32
    %c0_i32_1 = arith.constant 0 : i32
    %c0_i32_2 = arith.constant 0 : i32
    return %c0_i32, %c0_i32_0, %c0_i32_1 : i32, i32, i32
  }
  func.func @transform_10(%arg0: i32) -> (i32, i32, i32) {
    %c0_i32 = arith.constant 0 : i32
    %c0_i32_0 = arith.constant 0 : i32
    %c0_i32_1 = arith.constant 0 : i32
    %c0_i32_2 = arith.constant 0 : i32
    return %c0_i32, %c0_i32_0, %c0_i32_1 : i32, i32, i32
  }
  func.func @transform_11(%arg0: i32) -> (i32, i32, i32) {
    %c0_i32 = arith.constant 0 : i32
    %c0_i32_0 = arith.constant 0 : i32
    %c0_i32_1 = arith.constant 0 : i32
    %c0_i32_2 = arith.constant 0 : i32
    return %c0_i32, %c0_i32_0, %c0_i32_1 : i32, i32, i32
  }
  func.func @transform_12(%arg0: i32) -> (i32, i32, i32) {
    %c0_i32 = arith.constant 0 : i32
    %c0_i32_0 = arith.constant 0 : i32
    %c0_i32_1 = arith.constant 0 : i32
    %c0_i32_2 = arith.constant 0 : i32
    return %c0_i32, %c0_i32_0, %c0_i32_1 : i32, i32, i32
  }
  func.func @transform_13(%arg0: i32) -> (i32, i32, i32) {
    %c0_i32 = arith.constant 0 : i32
    %c0_i32_0 = arith.constant 0 : i32
    %c0_i32_1 = arith.constant 0 : i32
    %c0_i32_2 = arith.constant 0 : i32
    return %c0_i32, %c0_i32_0, %c0_i32_1 : i32, i32, i32
  }
  func.func @transform_14(%arg0: i32) -> (i32, i32, i32) {
    %c0_i32 = arith.constant 0 : i32
    %c0_i32_0 = arith.constant 0 : i32
    %c0_i32_1 = arith.constant 0 : i32
    %c0_i32_2 = arith.constant 0 : i32
    return %c0_i32, %c0_i32_0, %c0_i32_1 : i32, i32, i32
  }
  func.func @transform_15(%arg0: i32) -> (i32, i32, i32) {
    %c0_i32 = arith.constant 0 : i32
    %c0_i32_0 = arith.constant 0 : i32
    %c0_i32_1 = arith.constant 0 : i32
    %c0_i32_2 = arith.constant 0 : i32
    return %c0_i32, %c0_i32_0, %c0_i32_1 : i32, i32, i32
  }
  func.func @transform_16(%arg0: i32) -> (i32, i32, i32) {
    %c0_i32 = arith.constant 0 : i32
    %c0_i32_0 = arith.constant 0 : i32
    %c0_i32_1 = arith.constant 0 : i32
    %c0_i32_2 = arith.constant 0 : i32
    return %c0_i32, %c0_i32_0, %c0_i32_1 : i32, i32, i32
  }
  func.func @transform_17(%arg0: i32) -> (i32, i32, i32) {
    %c0_i32 = arith.constant 0 : i32
    %c0_i32_0 = arith.constant 0 : i32
    %c0_i32_1 = arith.constant 0 : i32
    return %arg0, %c0_i32, %c0_i32_0 : i32, i32, i32
  }
}

</mosaic_0001>

<bundles_post_ra>
// kernel: bert_wrap_forward.1
= control target key start
LH: loop header
LB: loop body
LE: loop exit
PB: predicated region body
PF: predicated region fallthrough
CT: control target
= control target key end

     0   :  { %s4459_s0 = inlined_call_operand.vmem [shape: f32[2,16,128], index: 0, kind: input, shape index: {}]   ;;  %s4460_s1 = inlined_call_operand.vmem [shape: f32[2,1,16], index: 1, kind: input, shape index: {}]   ;;  %s4461_s2 = inlined_call_operand.vmem [shape: f32[2,128], index: 2, kind: input, shape index: {}]   ;;  %s4462_s3 = inlined_call_operand.vmem [shape: f32[1,128], index: 3, kind: input, shape index: {}]   ;;  %s4463_s4 = inlined_call_operand.vmem [shape: f32[1,128], index: 4, kind: input, shape index: {}]   ;;  %s4464_s5 = inlined_call_operand.hbm [shape: f32[2,128,384], index: 5, kind: input, shape index: {}]   ;;  %s4465_s6 = inlined_call_operand.vmem [shape: f32[2,1,384], index: 6, kind: input, shape index: {}]   ;;  %s4466_s7 = inlined_call_operand.vmem [shape: f32[2,128,128], index: 7, kind: input, shape index: {}]   ;;  %s4467_s8 = inlined_call_operand.vmem [shape: f32[2,1,128], index: 8, kind: input, shape index: {}]   ;;  %s4468_s9 = inlined_call_operand.vmem [shape: f32[2,1,128], index: 9, kind: input, shape index: {}]   ;;  %s4469_s10 = inlined_call_operand.vmem [shape: f32[2,1,128], index: 10, kind: input, shape index: {}]   ;;  %s4470_s11 = inlined_call_operand.hbm [shape: f32[2,128,128], index: 11, kind: input, shape index: {}]   ;;  %s4471_s12 = inlined_call_operand.vmem [shape: f32[2,1,128], index: 12, kind: input, shape index: {}]   ;;  %s4472_s13 = inlined_call_operand.hbm [shape: f32[2,128,128], index: 13, kind: input, shape index: {}]   ;;  %s4473_s14 = inlined_call_operand.vmem [shape: f32[2,1,128], index: 14, kind: input, shape index: {}]   ;;  %s4474_s15 = inlined_call_operand.vmem [shape: f32[2,1,128], index: 15, kind: input, shape index: {}]   ;;  %s4475_s16 = inlined_call_operand.vmem [shape: f32[2,1,128], index: 16, kind: input, shape index: {}]   ;;  %s4476_s17 = inlined_call_operand.vmem [shape: f32[2,16,128], index: 17, kind: output, shape index: {}]  }
   0x1   :  { %4483 = sst [smem:[#allocation10_spill]] %s4459_s0 }
   0x2   :  { %4484 = sst [smem:[#allocation11_spill]] %s4460_s1 }
   0x3   :  { %4485 = sst [smem:[#allocation12_spill]] %s4474_s15 }
   0x4   :  { %4486 = sst [smem:[#allocation13_spill]] %s4475_s16 }
   0x5   :  { %4487 = sst [smem:[#allocation14_spill]] %s4476_s17 }
   0x6   :  { %22 = vsyncpa [#allocation3], 0 }
   0x7   :  { %23 = vsyncpa [#allocation5], 0  ;;  %s3991_s24 = smov 0  }
   0x8 LB: > { %4488 = sst [smem:[#allocation9_spill]] %s3891_s24  ;;  %s3893_s25 = smov [#allocation4]   ;;  %s3891_s24 = sphi %s3991_s24, %s29_s24  }
   0x9   : > { %s476_s26 = sshll.u32 %s3893_s25, 4  ;;  %s3997_s27 = sadd.s32 4294967295, %s3891_s24   ;;  %s4006_s26 = int_to_ptr.vmem [resolvable:$true] %s476_s26 }
   0xa   : > { %p2755_p0 = scmp.ge.s32.totalorder %s3891_s24, 1  ;;  %p427_p1 = scmp.lt.s32.totalorder %s3891_s24, 3 }
   0xb   : > { %p4481_p2 = scmp.eq.s32.totalorder %s3997_s27, 0  ;;  %s3894_s29 = smov [#allocation2]  }
   0xc   : > { %p4002_p3 = pnand %p2755_p0, %p427_p1  ;;  %s448_s0 = sshll.u32 %s3894_s29, 4  ;;  %s4010_s0 = int_to_ptr.vmem [resolvable:$true] %s448_s0 }
   0xd   : > { %s3895_s18 = smov [#allocation6]   ;;  %s3793_s21 = scalar_lea.hbm %s4470_s11, 4096 }
   0xe   : > { %s4489_s28 = scalar_select %p4002_p3, 1, 0 }
   0xf   : > { %p3701_p4 = pneg %p4002_p3  ;;  %s4018_s19 = sshll.u32 %s3895_s18, 4  ;;  %s493_s19 = int_to_ptr.vmem [resolvable:$true] %s4018_s19 }
  0x10   : > { %p3794_p6 = scmp.ne.s32.totalorder %s4470_s11, %s3793_s21  ;;  %p3800_p10 = scmp.lt.u32.totalorder %s3793_s21, %s4470_s11 }
  0x11   : > { %p4014_p5 = pnand %p4481_p2, %p3701_p4 }
  0x13   : > { %p4028_p7 = pneg %p4014_p5 }
  0x15   : > { %p3796_p8 = pnand %p4028_p7, %p3794_p6 }
  0x17   : > { %p3797_p9 = pneg %p3796_p8 }
  0x19   : > { %p3802_p11 = pnand %p3800_p10, %p3797_p9 }
  0x1b   : > { %3805 = shalt.err (!%p3802_p11)
}
  0x1c   : > { %s3806_s1 = scalar_lea.vmem %s4006_s26, 4096  ;;  %p3814_p1 = scmp.lt.s32.totalorder %s4006_s26, %s4006_s26 }
  0x1d   : > { %p3807_p12 = scmp.ne.s32.totalorder %s4006_s26, %s3806_s1  ;;  %p3815_p4 = scmp.lt.s32.totalorder %s3806_s1, %s3806_s1 }
  0x1f   : > { %p3809_p13 = pnand %p3807_p12, %p4028_p7  ;;  %p3816_p6 = por %p3815_p4, %p3814_p1 }
  0x21   : > { %p3810_p0 = pneg %p3809_p13 }
  0x23   : > { %p3817_p8 = pnand %p3816_p6, %p3810_p0 }
  0x25   : > { %3820 = shalt.err (!%p3817_p8)
}
  0x26   : > { %s4480_s20 = smov 128   ;;  %s3897_s21 = smov 8  }
  0x27   : > { %3707 = dma.hbm_to_vmem [thread:$0]  (!%p4014_p5), %s4470_s11, 4096, %s4006_s26, [#allocation5], %s4480_s20, %s4480_s20, %s3897_s21  }
  0x28   : > { %s3821_s1 = scalar_lea.hbm %s4464_s5, 12288 }
  0x29   : > { %p3822_p9 = scmp.ne.s32.totalorder %s4464_s5, %s3821_s1  ;;  %p3828_p12 = scmp.lt.u32.totalorder %s3821_s1, %s4464_s5 }
  0x2b   : > { %p3824_p10 = pnand %p3822_p9, %p4028_p7 }
  0x2d   : > { %p3825_p11 = pneg %p3824_p10 }
  0x2f   : > { %p3830_p13 = pnand %p3828_p12, %p3825_p11 }
  0x31   : > { %3833 = shalt.err (!%p3830_p13)
}
  0x32   : > { %s3834_s26 = scalar_lea.vmem %s4010_s0, 12288  ;;  %p3842_p6 = scmp.lt.s32.totalorder %s4010_s0, %s4010_s0 }
  0x33   : > { %p3835_p0 = scmp.ne.s32.totalorder %s4010_s0, %s3834_s26  ;;  %p3843_p8 = scmp.lt.s32.totalorder %s3834_s26, %s3834_s26 }
  0x35   : > { %p3837_p1 = pnand %p3835_p0, %p4028_p7  ;;  %p3844_p9 = por %p3843_p8, %p3842_p6 }
  0x37   : > { %p3838_p4 = pneg %p3837_p1 }
  0x39   : > { %p3845_p10 = pnand %p3844_p9, %p3838_p4 }
  0x3b   : > { %3848 = shalt.err (!%p3845_p10)
}
  0x3c   : > { %s3898_s17 = smov 384   ;;  %s3899_s15 = smov 24  }
  0x3d   : > { %3704 = dma.hbm_to_vmem [thread:$0]  (!%p4014_p5), %s4464_s5, 12288, %s4010_s0, [#allocation3], %s3898_s17, %s3898_s17, %s3899_s15  }
  0x3e   : > { %s3849_s29 = scalar_lea.hbm %s4472_s13, 4096 }
  0x3f   : > { %p3850_p11 = scmp.ne.s32.totalorder %s4472_s13, %s3849_s29  ;;  %p3856_p0 = scmp.lt.u32.totalorder %s3849_s29, %s4472_s13 }
  0x41   : > { %p3852_p12 = pnand %p3850_p11, %p4028_p7 }
  0x43   : > { %p3853_p13 = pneg %p3852_p12 }
  0x45   : > { %p3858_p1 = pnand %p3856_p0, %p3853_p13 }
  0x47   : > { %3861 = shalt.err (!%p3858_p1)
}
  0x48   : > { %s3862_s16 = scalar_lea.vmem %s493_s19, 4096  ;;  %p3870_p9 = scmp.lt.s32.totalorder %s493_s19, %s493_s19 }
  0x49   : > { %p3863_p4 = scmp.ne.s32.totalorder %s493_s19, %s3862_s16  ;;  %p3871_p10 = scmp.lt.s32.totalorder %s3862_s16, %s3862_s16 }
  0x4b   : > { %p3865_p6 = pnand %p3863_p4, %p4028_p7  ;;  %p3872_p2 = por %p3871_p10, %p3870_p9 }
  0x4d   : > { %p3866_p8 = pneg %p3865_p6 }
  0x4f   : > { %p3873_p3 = pnand %p3872_p2, %p3866_p8 }
  0x51   : > { %3876 = shalt.err (!%p3873_p3)
}
  0x52   : > { %s4492_s0 = smov 128   ;;  %p4493_p11 = scmp.ne.s32.totalorder %s4489_s28, 0 }
  0x53   : > { %3710 = dma.hbm_to_vmem [thread:$0]  (!%p4014_p5), %s4472_s13, 4096, %s493_s19, [#allocation5], %s4492_s0, %s4492_s0, %s3897_s21  }
  0x54   : > { %531 = sbr.rel (%p4493_p11) target bundleno = 4274 (0x10b2), region = 88  ;;  %p4494_p7 = scmp.eq.s32.totalorder (!%p4493_p11), %s3997_s27, 0 }
  0x5b   : > { %3882 = dma.done.wait (%p4494_p7), [#allocation3], 12288   ;;  %p4495_p12 = pmov %p4494_p7 }
  0x5c   : > { %p4496_p2 = pmov %p4494_p7 }
  0x5d   : > { %3884 = vsyncadd (%p4495_p12), [#allocation3], 4294955008 }
  0x5e   : > { %3886 = dma.done.wait (%p4496_p2), [#allocation5], 8192   ;;  %p4497_p3 = pmov %p4496_p2 }
  0x5f   : > { %p594_p13 = scmp.lt.s32.totalorder %s3997_s27, 1  ;;  %s4498_s25 = sld [smem:[#allocation10_spill]]  ;;  %v656_v4 = vld [vmem:[#allocation2 + $0x8] sm:$0xff]  ;;  %v659_v5 = vld [vmem:[#allocation2 + $0x20] sm:$0xff]  ;;  %v658_v8 = vld [vmem:[#allocation2 + $0x18] sm:$0xff]  ;;  %v3900_v55 = vmov 0.0  }
  0x60   : > { %3888 = vsyncadd (%p4497_p3), [#allocation5], 4294959104  ;;  %v655_v6 = vld [vmem:[#allocation2] sm:$0xff]  ;;  %v3333_v7 = vpack.c.bf16 %v659_v5, %v656_v4  ;;  %v657_v9 = vld [vmem:[#allocation2 + $0x10] sm:$0xff]  ;;  %784 = vmatprep.mubr.f32.mxu0 %v3900_v55  ;;  %s4499_s20 = sld [smem:[#allocation11_spill]]  ;;  %vm963_vm0 = vcmask 130048  }
  0x61   : > { %s4505_s27 = smov (!%p594_p13, %s3997_s27), 1  ;;  %v660_v10 = vld [vmem:[#allocation2 + $0x28] sm:$0xff]  ;;  %v3335_v11 = vpack.c.bf16 %v658_v8, %v655_v6  ;;  %v662_v13 = vld [vmem:[#allocation2 + $0x38] sm:$0xff]  ;;  %v665_v14 = vld [vmem:[#allocation2 + $0x50] sm:$0xff]  ;;  %s4500_s16 = sld [smem:[#allocation12_spill]] }
  0x62   : > { %s2819_s28 = sshll.u32 %s4505_s27, 4  ;;  %v3365_v12 = vpack.c.bf16 %v660_v10, %v657_v9  ;;  %3334 = vmatprep.subr.bf16.mxu0 %v3333_v7  ;;  %v3337_v15 = vpack.c.bf16 %v665_v14, %v662_v13  ;;  %v661_v16 = vld [vmem:[#allocation2 + $0x30] sm:$0xff]  ;;  %v664_v17 = vld [vmem:[#allocation2 + $0x48] sm:$0xff]  ;;  %v663_v18 = vld [vmem:[#allocation2 + $0x40] sm:$0xff]  ;;  %s4502_s29 = sld [smem:[#allocation14_spill]] }
  0x63   : > { %3336 = vmatpush1.bf16.msra.mxu0 %v3335_v11  ;;  %v3339_v19 = vpack.c.bf16 %v664_v17, %v661_v16  ;;  %v666_v20 = vld [vmem:[#allocation2 + $0x58] sm:$0xff]  ;;  %v668_v22 = vld [vmem:[#allocation2 + $0x68] sm:$0xff]  ;;  %v671_v23 = vld [vmem:[#allocation2 + $0x80] sm:$0xff] }
  0x64   : > { %3366 = vmatprep.subr.bf16.mxu1 %v3365_v12  ;;  %3338 = vmatprep.subr.bf16.mxu0 %v3337_v15  ;;  %v3369_v21 = vpack.c.bf16 %v666_v20, %v663_v18  ;;  %v3341_v24 = vpack.c.bf16 %v671_v23, %v668_v22  ;;  %v667_v25 = vld [vmem:[#allocation2 + $0x60] sm:$0xff]  ;;  %v670_v26 = vld [vmem:[#allocation2 + $0x78] sm:$0xff]  ;;  %v669_v27 = vld [vmem:[#allocation2 + $0x70] sm:$0xff] }
  0x65   : > { %s598_s21 = scalar_lea.vmem %s4498_s25, %s2819_s28  ;;  %3368 = vmatpush3.bf16.msra.mxu1 %v3365_v12  ;;  %v3343_v28 = vpack.c.bf16 %v670_v26, %v667_v25  ;;  %v672_v29 = vld [vmem:[#allocation2 + $0x88] sm:$0xff]  ;;  %v674_v31 = vld [vmem:[#allocation2 + $0x98] sm:$0xff]  ;;  %v677_v32 = vld [vmem:[#allocation2 + $0xb0] sm:$0xff] }
  0x66   : > { %v4117_v0 = vld [vmem:[%s598_s21 + $0x8] sm:$0xff]  ;;  %v4119_v1 = vld [vmem:[%s598_s21] sm:$0xff]  ;;  %3370 = vmatprep.subr.bf16.mxu1 %v3369_v21  ;;  %v3373_v30 = vpack.c.bf16 %v672_v29, %v669_v27  ;;  %v3345_v33 = vpack.c.bf16 %v677_v32, %v674_v31  ;;  %v673_v34 = vld [vmem:[#allocation2 + $0x90] sm:$0xff]  ;;  %s601_s17 = scalar_lea.vmem %s4499_s20, %s4505_s27 }
  0x67   : > { %615 = vadd.xlane.f32.xlu1 %v4117_v0  ;;  %613 = vadd.xlane.f32.xlu0 %v4119_v1  ;;  %v620_v2 = vmul.f32 %v4117_v0, %v4117_v0  ;;  %v619_v3 = vmul.f32 %v4119_v1, %v4119_v1  ;;  %v676_v35 = vld [vmem:[#allocation2 + $0xa8] sm:$0xff]  ;;  %v675_v36 = vld [vmem:[#allocation2 + $0xa0] sm:$0xff]  ;;  %v678_v38 = vld [vmem:[#allocation2 + $0xb8] sm:$0xff] }
  0x68   : > { %3340 = vmatpush1.bf16.msra.mxu0 %v3339_v19  ;;  %v3347_v37 = vpack.c.bf16 %v676_v35, %v673_v34  ;;  %v3377_v39 = vpack.c.bf16 %v678_v38, %v675_v36  ;;  %v680_v40 = vld [vmem:[#allocation2 + $0xc8] sm:$0xff]  ;;  %v683_v41 = vld [vmem:[#allocation2 + $0xe0] sm:$0xff]  ;;  %v682_v44 = vld [vmem:[#allocation2 + $0xd8] sm:$0xff]  ;;  %s606_s18 = scalar_lea.vmem %s4502_s29, %s2819_s28 }
  0x69   : > { %3372 = vmatpush3.bf16.msra.mxu1 %v3369_v21  ;;  %3342 = vmatprep.subr.bf16.mxu0 %v3341_v24  ;;  %v3349_v42 = vpack.c.bf16 %v683_v41, %v680_v40  ;;  %v679_v43 = vld [vmem:[#allocation2 + $0xc0] sm:$0xff]  ;;  %v681_v45 = vld [vmem:[#allocation2 + $0xd0] sm:$0xff]  ;;  %v684_v47 = vld [vmem:[#allocation2 + $0xe8] sm:$0xff] }
  0x6a   : > { %3374 = vmatprep.subr.bf16.mxu1 %v3373_v30  ;;  %v3351_v46 = vpack.c.bf16 %v682_v44, %v679_v43  ;;  %v686_v48 = vld [vmem:[#allocation2 + $0xf8] sm:$0xff]  ;;  %v689_v49 = vld [vmem:[#allocation2 + $0x110] sm:$0xff]  ;;  %v3381_v50 = vpack.c.bf16 %v684_v47, %v681_v45  ;;  %v688_v53 = vld [vmem:[#allocation2 + $0x108] sm:$0xff] }
  0x6b   : > { %623 = vadd.xlane.f32.xlu1 %v620_v2  ;;  %621 = vadd.xlane.f32.xlu0 %v619_v3  ;;  %v3353_v51 = vpack.c.bf16 %v689_v49, %v686_v48  ;;  %v685_v52 = vld [vmem:[#allocation2 + $0xf0] sm:$0xff]  ;;  %v687_v54 = vld [vmem:[#allocation2 + $0x100] sm:$0xff]  ;;  %v690_v57 = vld [vmem:[#allocation2 + $0x118] sm:$0xff] }
  0x6c   : > { %3344 = vmatpush1.bf16.msra.mxu0 %v3343_v28  ;;  %v3355_v56 = vpack.c.bf16 %v688_v53, %v685_v52  ;;  %v692_v58 = vld [vmem:[#allocation2 + $0x128] sm:$0xff]  ;;  %v695_v59 = vld [vmem:[#allocation2 + $0x140] sm:$0xff]  ;;  %v3385_v60 = vpack.c.bf16 %v690_v57, %v687_v54  ;;  %v694_v63 = vld [vmem:[#allocation2 + $0x138] sm:$0xff] }
  0x6d   : > { %3376 = vmatpush3.bf16.msra.mxu1 %v3373_v30  ;;  %3346 = vmatprep.subr.bf16.mxu0 %v3345_v33  ;;  %v3357_v61 = vpack.c.bf16 %v695_v59, %v692_v58  ;;  %v691_v62 = vld [vmem:[#allocation2 + $0x120] sm:$0xff]  ;;  %v693_v2 = vld [vmem:[#allocation2 + $0x130] sm:$0xff]  ;;  %v696_v3 = vld [vmem:[#allocation2 + $0x148] sm:$0xff] }
  0x6e   : > { %3378 = vmatprep.subr.bf16.mxu1 %v3377_v39  ;;  %v698_v4 = vld [vmem:[#allocation2 + $0x158] sm:$0xff]  ;;  %v701_v5 = vld [vmem:[#allocation2 + $0x170] sm:$0xff]  ;;  %v3389_v6 = vpack.c.bf16 %v696_v3, %v693_v2  ;;  %v3359_v7 = vpack.c.bf16 %v694_v63, %v691_v62  ;;  %v699_v8 = vld [vmem:[#allocation2 + $0x160] sm:$0xff] }
  0x6f   : > { %v702_v9 = vld [vmem:[#allocation2 + $0x178] sm:$0xff]  ;;  %v3361_v10 = vpack.c.bf16 %v701_v5, %v698_v4  ;;  %v697_v11 = vld [vmem:[#allocation2 + $0x150] sm:$0xff]  ;;  %v700_v12 = vld [vmem:[#allocation2 + $0x168] sm:$0xff] }
  0x70   : > { %3348 = vmatpush1.bf16.msra.mxu0 %v3347_v37  ;;  %v3393_v13 = vpack.c.bf16 %v702_v9, %v699_v8  ;;  %v3363_v14 = vpack.c.bf16 %v700_v12, %v697_v11  ;;  %v2768_v32 = vld [vmem:[%s4462_s3] ss:$0 sm:$0xff] }
  0x71   : > { %3380 = vmatpush3.bf16.msra.mxu1 %v3377_v39  ;;  %3350 = vmatprep.subr.bf16.mxu0 %v3349_v42  ;;  %v2769_v35 = vld [vmem:[%s4463_s4] ss:$0 sm:$0xff] }
  0x72   : > { %3382 = vmatprep.subr.bf16.mxu1 %v3381_v50  ;;  %v703_v42 = vld [vmem:[%s4465_s6] sm:$0x7] }
  0x73   : > { %v610_v45 = vld [vmem:[%s4461_s2] sm:$0x3] }
  0x74   : > { %3352 = vmatpush1.bf16.msra.mxu0 %v3351_v46 }
  0x75   : > { %3354 = vmatprep.subr.bf16.mxu0 %v3353_v51  ;;  %3384 = vmatpush3.bf16.msra.mxu1 %v3381_v50 }
  0x76   : > { %3386 = vmatprep.subr.bf16.mxu1 %v3385_v60 }
  0x78   : > { %3356 = vmatpush1.bf16.msra.mxu0 %v3355_v56 }
  0x79   : > { %3358 = vmatprep.subr.bf16.mxu0 %v3357_v61  ;;  %3388 = vmatpush3.bf16.msra.mxu1 %v3385_v60 }
  0x7a   : > { %3390 = vmatprep.subr.bf16.mxu1 %v3389_v6 }
  0x7c   : > { %3360 = vmatpush1.bf16.msra.mxu0 %v3359_v7 }
  0x7d   : > { %3362 = vmatprep.subr.bf16.mxu0 %v3361_v10  ;;  %3392 = vmatpush3.bf16.msra.mxu1 %v3389_v6 }
  0x7e   : > { %3394 = vmatprep.subr.bf16.mxu1 %v3393_v13 }
  0x80   : > { %3364 = vmatpush1.bf16.msra.mxu0 %v3363_v14 }
  0x81   : > { %3396 = vmatpush3.bf16.msra.mxu1 %v3393_v13 }
  0xf4   : > { %v616_v15 = vpop.xlane.xlu1 %615  ;;  %v614_v16 = vpop.xlane.xlu0 %613 }
  0xf5   : > { %v618_v17 = vmul.f32 0.03125, %v616_v15  ;;  %v617_v18 = vmul.f32 0.03125, %v614_v16 }
  0xf7   : > { %v628_v19 = vmul.f32 %v618_v17, %v618_v17  ;;  %v627_v22 = vmul.f32 %v617_v18, %v617_v18  ;;  %v632_v29 = vsub.f32 %v4117_v0, %v618_v17  ;;  %v631_v31 = vsub.f32 %v4119_v1, %v617_v18  ;;  %v4185_v18 = vld [vmem:[%s601_s17] ss:$0 sm:$0xff]  ;;  %s4501_s17 = sld [smem:[#allocation13_spill]] }
  0xf8   : > { %v624_v20 = vpop.xlane.xlu1 %623  ;;  %v622_v21 = vpop.xlane.xlu0 %621  ;;  %v705_v0 = vlaneseq }
  0xf9   : > { %v626_v23 = vmul.f32 0.03125, %v624_v20  ;;  %v625_v24 = vmul.f32 0.03125, %v622_v21 }
  0xfa   : > { %v4145_v1 = vshrl.u32 %v705_v0, 7 }
  0xfb   : > { %v630_v25 = vsub.f32 %v626_v23, %v628_v19  ;;  %v629_v26 = vsub.f32 %v625_v24, %v627_v22 }
  0xfc   : > { %v4148_v41 = vsub.s32 0, %v4145_v1  ;;  %v715_v43 = vsub.s32 2, %v4145_v1  ;;  %v4155_v44 = vsub.s32 1, %v4145_v1 }
  0xfd   : > { %v634_v27 = vadd.f32 1e-12, %v630_v25  ;;  %v633_v28 = vadd.f32 1e-12, %v629_v26 }
  0xfe   : > { %v708_v46 = vrot.slane %v703_v42, %v4148_v41  ;;  %v716_v47 = vrot.slane %v703_v42, %v715_v43  ;;  %v4164_v49 = vrot.slane %v610_v45, %v4148_v41  ;;  %v712_v50 = vrot.slane %v703_v42, %v4155_v44 }
  0xff   : > { %3733 = vrsqrt.f32 %v634_v27  ;;  %v4168_v51 = vrot.slane %v610_v45, %v4155_v44 }
 0x100   : > { %3735 = vrsqrt.f32 %v633_v28 }
 0x109   : > { %v3734_v30 = vpop.eup %3733 }
 0x10a   : > { %v3736_v33 = vpop.eup %3735  ;;  %v638_v34 = vmul.f32 %v3734_v30, %v632_v29 }
 0x10b   : > { %v637_v36 = vmul.f32 %v3736_v33, %v631_v31 }
 0x10c   : > { %v646_v37 = vmul.f32 %v2768_v32, %v638_v34 }
 0x10d   : > { %v645_v38 = vmul.f32 %v2768_v32, %v637_v36 }
 0x10e   : > { %v4136_v39 = vadd.f32 %v2769_v35, %v646_v37 }
 0x10f   : > { %v4138_v40 = vadd.f32 %v2769_v35, %v645_v38 }
 0x111   : > { %785 = vmatmul.mubr.f32.vlgmr.msra.gmra.mrb[0].mxu0 %v4138_v40  ;;  %3029 = vmatprep.mubr.f32.mxu1 %v4138_v40 }
 0x112   : > { %3030 = vmatmul.mubr.f32.vlgmr.msra.gmra.mrb[0].mxu1 %v4136_v39  ;;  %790 = vmatprep.mubr.f32.mxu0 %v3900_v55 }
 0x115   : > { %791 = vmatmul.mubr.f32.gmra.mrb[2].mxu0 %v4136_v39 }
 0x1e4   : > { %v786_v48 = vpop.f32.mrb[0].mxu0 }
 0x1e5   : > { %v787_v52 = vadd.f32 %v786_v48, %v708_v46  ;;  %v788_v53 = vpop.f32.mrb[1].mxu0  ;;  %v3031_v54 = vpop.f32.mrb[0].mxu1 }
 0x1e6   : > { %v869_v56 = vadd.f32 %v3031_v54, %v716_v47  ;;  %v863_v57 = vpop.f32.mrb[1].mxu1  ;;  %v789_v60 = vadd.f32 %v788_v53, %v712_v50 }
 0x1e7   : > { %v872_v58 = vmul.f32 0.25, %v787_v52  ;;  %v864_v59 = vadd.f32 %v863_v57, %v716_v47  ;;  %v1254_v57 = vld [vmem:[%s4466_s7 + $0x8] sm:$0xff] }
 0x1e8   : > { %v881_v61 = vmul.f32 %v4164_v49, %v869_v56  ;;  %v993_v62 = vmul.f32 %v4168_v51, %v869_v56  ;;  %v792_v63 = vpop.f32.mrb[2].mxu0  ;;  %v878_v8 = vmul.f32 %v4164_v49, %v789_v60  ;;  %v990_v9 = vmul.f32 %v4168_v51, %v789_v60  ;;  %v1253_v56 = vld [vmem:[%s4466_s7] sm:$0xff]  ;;  %v1256_v60 = vld [vmem:[%s4466_s7 + $0x18] sm:$0xff] }
 0x1e9   : > { %v880_v2 = vmul.f32 %v4164_v49, %v864_v59  ;;  %v992_v3 = vmul.f32 %v4168_v51, %v864_v59  ;;  %v794_v4 = vpop.f32.mrb[3].mxu0  ;;  %3036 = vmatprep.mubr.f32.mxu1 %v872_v58  ;;  %v793_v14 = vadd.f32 %v792_v63, %v708_v46  ;;  %v3413_v59 = vpack.c.bf16 %v1254_v57, %v1253_v56  ;;  %v1258_v63 = vld [vmem:[%s4466_s7 + $0x28] sm:$0xff]  ;;  %v1403_v56 = vld [vmem:[#allocation4 + $0x30] sm:$0xff]  ;;  %v1404_v57 = vld [vmem:[#allocation4 + $0x38] sm:$0xff] }
 0x1ea   : > { %v795_v5 = vadd.f32 %v794_v4, %v712_v50  ;;  %v1260_v4 = vld [vmem:[%s4466_s7 + $0x38] sm:$0xff] }
 0x1eb   : > { %v3405_v6 = vpack.c.bf16 %v993_v62, %v992_v3  ;;  %v4174_v7 = vpack.c.bf16 %v881_v61, %v880_v2  ;;  %v873_v15 = vmul.f32 0.25, %v793_v14  ;;  %v1257_v62 = vld [vmem:[%s4466_s7 + $0x20] sm:$0xff]  ;;  %v1259_v3 = vld [vmem:[%s4466_s7 + $0x30] sm:$0xff]  ;;  %v1266_v14 = vld [vmem:[%s4466_s7 + $0x68] sm:$0xff] }
 0x1ec   : > { %v879_v10 = vmul.f32 %v4164_v49, %v795_v5  ;;  %v991_v11 = vmul.f32 %v4168_v51, %v795_v5  ;;  %v3421_v2 = vpack.c.bf16 %v1258_v63, %v1257_v62  ;;  %v3425_v5 = vpack.c.bf16 %v1260_v4, %v1259_v3  ;;  %v1408_v63 = vld [vmem:[#allocation4 + $0x58] sm:$0xff]  ;;  %v1409_v3 = vld [vmem:[#allocation4 + $0x60] sm:$0xff]  ;;  %v1410_v4 = vld [vmem:[#allocation4 + $0x68] sm:$0xff] }
 0x1ed   : > { %3406 = vmatprep.subr.bf16.mxu0 %v3405_v6 }
 0x1ee   : > { %3408 = vmatpush3.bf16.msra.mxu0 %v3405_v6  ;;  %v3397_v12 = vpack.c.bf16 %v879_v10, %v878_v8  ;;  %v3401_v13 = vpack.c.bf16 %v991_v11, %v990_v9  ;;  %v1261_v6 = vld [vmem:[%s4466_s7 + $0x40] sm:$0xff]  ;;  %v1262_v8 = vld [vmem:[%s4466_s7 + $0x48] sm:$0xff]  ;;  %v1263_v10 = vld [vmem:[%s4466_s7 + $0x50] sm:$0xff] }
 0x1ef   : > { %3410 = vmatprep.subr.bf16.mxu0 %v4174_v7  ;;  %v3429_v9 = vpack.c.bf16 %v1262_v8, %v1261_v6  ;;  %v1264_v11 = vld [vmem:[%s4466_s7 + $0x58] sm:$0xff]  ;;  %v1411_v6 = vld [vmem:[#allocation4 + $0x70] sm:$0xff] }
 0x1f0   : > { %3398 = vmatprep.subr.bf16.mxu1 %v3397_v12  ;;  %v1412_v8 = vld [vmem:[#allocation4 + $0x78] sm:$0xff] }
 0x1f1   : > { %3400 = vmatpush3.bf16.xpose.msra.mxu1 %v3397_v12  ;;  %v3433_v12 = vpack.c.bf16 %v1264_v11, %v1263_v10  ;;  %v1513_v10 = vld [vmem:[#allocation6] sm:$0xff]  ;;  %v1514_v11 = vld [vmem:[#allocation6 + $0x8] sm:$0xff] }
 0x1f2   : > { %3402 = vmatprep.subr.bf16.mxu1 %v3401_v13 }
 0x1f8   : > { %3037 = vmatmul.mubr.f32.vlgmr.msra.gmra.mrb[2].mxu1 %v873_v15 }
 0x1f9   : > { %3404 = vmatpush3.bf16.xpose.msra.mxu1 %v3401_v13  ;;  %3043 = vmatprep.mubr.f32.mxu1 %v872_v58  ;;  %v1255_v58 = vld [vmem:[%s4466_s7 + $0x10] sm:$0xff]  ;;  %v1265_v13 = vld [vmem:[%s4466_s7 + $0x60] sm:$0xff] }
 0x1fa   : > { %v3417_v61 = vpack.c.bf16 %v1256_v60, %v1255_v58  ;;  %3414 = vmatprep.subr.bf16.mxu1 %v3413_v59  ;;  %v3457_v58 = vpack.c.bf16 %v1404_v57, %v1403_v56  ;;  %v1406_v60 = vld [vmem:[#allocation4 + $0x48] sm:$0xff]  ;;  %v1523_v56 = vld [vmem:[#allocation6 + $0x50] sm:$0xff]  ;;  %v1524_v57 = vld [vmem:[#allocation6 + $0x58] sm:$0xff] }
 0x200   : > { %3044 = vmatmul.mubr.f32.vlgmr.msra.gmra.mrb[4].mxu1 %v873_v15  ;;  %v3437_v15 = vpack.c.bf16 %v1266_v14, %v1265_v13 }
 0x201   : > { %3416 = vmatpush3.bf16.msra.mxu1 %v3413_v59  ;;  %v1405_v59 = vld [vmem:[#allocation4 + $0x40] sm:$0xff] }
 0x202   : > { %3418 = vmatprep.subr.bf16.mxu1 %v3417_v61  ;;  %v3461_v62 = vpack.c.bf16 %v1406_v60, %v1405_v59  ;;  %v1525_v59 = vld [vmem:[#allocation6 + $0x60] sm:$0xff]  ;;  %v1526_v60 = vld [vmem:[#allocation6 + $0x68] sm:$0xff] }
 0x205   : > { %3420 = vmatpush3.bf16.msra.mxu1 %v3417_v61  ;;  %v1407_v61 = vld [vmem:[#allocation4 + $0x50] sm:$0xff] }
 0x206   : > { %3422 = vmatprep.subr.bf16.mxu1 %v3421_v2 }
 0x209   : > { %3424 = vmatpush3.bf16.msra.mxu1 %v3421_v2  ;;  %v3465_v2 = vpack.c.bf16 %v1408_v63, %v1407_v61  ;;  %v3501_v61 = vpack.c.bf16 %v1526_v60, %v1525_v59  ;;  %v1528_v63 = vld [vmem:[#allocation6 + $0x78] sm:$0xff]  ;;  %v1674_v59 = vld [vmem:[#allocation2 + $0x200] sm:$0xff] }
 0x20a   : > { %3426 = vmatprep.subr.bf16.mxu1 %v3425_v5  ;;  %v1666_v60 = vld [vmem:[#allocation2 + $0x1c0] sm:$0xff] }
 0x20d   : > { %3428 = vmatpush3.bf16.msra.mxu1 %v3425_v5  ;;  %v3469_v5 = vpack.c.bf16 %v1410_v4, %v1409_v3  ;;  %v2778_v3 = vld [vmem:[%s4471_s12] ss:$0 sm:$0xff] }
 0x20e   : > { %3430 = vmatprep.subr.bf16.mxu1 %v3429_v9 }
 0x211   : > { %3432 = vmatpush3.bf16.msra.mxu1 %v3429_v9  ;;  %v3473_v9 = vpack.c.bf16 %v1412_v8, %v1411_v6 }
 0x212   : > { %3434 = vmatprep.subr.bf16.mxu1 %v3433_v12 }
 0x215   : > { %3436 = vmatpush3.bf16.msra.mxu1 %v3433_v12  ;;  %v3477_v12 = vpack.c.bf16 %v1514_v11, %v1513_v10 }
 0x216   : > { %3438 = vmatprep.subr.bf16.mxu1 %v3437_v15 }
 0x219   : > { %3440 = vmatpush3.bf16.msra.mxu1 %v3437_v15 }
 0x2cb   : > { %v3038_v16 = vpop.f32.mrb[2].mxu1 }
 0x2cc   : > { %v954_v17 = vpop.f32.mrb[3].mxu1  ;;  %v960_v23 = vadd.f32 %v3038_v16, %v4185_v18  ;;  %v1267_v16 = vld [vmem:[%s4466_s7 + $0x70] sm:$0xff] }
 0x2cd   : > { %v955_v25 = vadd.f32 %v4185_v18, %v954_v17  ;;  %v1268_v17 = vld [vmem:[%s4466_s7 + $0x78] sm:$0xff] }
 0x2ce   : > { %v967_v27 = vsel %vm963_vm0, %v960_v23, -inf }
 0x2cf   : > { %v964_v28 = vsel %vm963_vm0, %v955_v25, -inf }
 0x2d3   : > { %v3045_v19 = vpop.f32.mrb[4].mxu1 }
 0x2d4   : > { %v1066_v20 = vadd.f32 %v3045_v19, %v4185_v18  ;;  %v1060_v21 = vpop.f32.mrb[5].mxu1  ;;  %v3441_v19 = vpack.c.bf16 %v1268_v17, %v1267_v16 }
 0x2d5   : > { %v1061_v22 = vadd.f32 %v4185_v18, %v1060_v21 }
 0x2d6   : > { %v1072_v24 = vsel %vm963_vm0, %v1066_v20, -inf  ;;  %3442 = vmatprep.subr.bf16.mxu1 %v3441_v19 }
 0x2d7   : > { %1073 = vmax.xlane.f32.xlu1 %v1072_v24  ;;  %v1069_v26 = vsel %vm963_vm0, %v1061_v22, -inf  ;;  %3444 = vmatpush3.bf16.msra.mxu1 %v3441_v19 }
 0x2d8   : > { %1070 = vmax.xlane.f32.xlu0 %v1069_v26  ;;  %3478 = vmatprep.subr.bf16.mxu1 %v3477_v12 }
 0x2db   : > { %968 = vmax.xlane.f32.xlu1 %v967_v27 }
 0x2dc   : > { %965 = vmax.xlane.f32.xlu0 %v964_v28 }
 0x364   : > { %v1074_v29 = vpop.xlane.xlu1 %1073 }
 0x365   : > { %v1076_v30 = vsub.f32 %v1066_v20, %v1074_v29  ;;  %v1071_v31 = vpop.xlane.xlu0 %1070 }
 0x366   : > { %v1075_v32 = vsub.f32 %v1061_v22, %v1071_v31 }
 0x367   : > { %v1079_v33 = vmul.f32 1.442695, %v1076_v30 }
 0x368   : > { %v1077_v34 = vmul.f32 1.442695, %v1075_v32  ;;  %v969_v35 = vpop.xlane.xlu1 %968 }
 0x369   : > { %3737 = vpow2.f32 %v1079_v33  ;;  %v971_v36 = vsub.f32 %v960_v23, %v969_v35  ;;  %v966_v37 = vpop.xlane.xlu0 %965  ;;  %v1398_v35 = vld [vmem:[#allocation4 + $0x8] sm:$0xff] }
 0x36a   : > { %3739 = vpow2.f32 %v1077_v34  ;;  %v970_v38 = vsub.f32 %v955_v25, %v966_v37  ;;  %v1397_v34 = vld [vmem:[#allocation4] sm:$0xff] }
 0x36b   : > { %v974_v0 = vmul.f32 1.442695, %v971_v36  ;;  %v3445_v36 = vpack.c.bf16 %v1398_v35, %v1397_v34  ;;  %v2777_v35 = vld [vmem:[%s4469_s10] ss:$0 sm:$0xff] }
 0x36c   : > { %v972_v42 = vmul.f32 1.442695, %v970_v38 }
 0x36d   : > { %3741 = vpow2.f32 %v974_v0 }
 0x36e   : > { %3743 = vpow2.f32 %v972_v42 }
 0x373   : > { %v4195_v45 = vpop.eup %3737 }
 0x374   : > { %v3740_v46 = vpop.eup %3739  ;;  %v1084_v47 = vsel %vm963_vm0, %v4195_v45, 0.0 }
 0x375   : > { %1085 = vadd.xlane.f32.xlu1 %v1084_v47  ;;  %v1081_v48 = vsel %vm963_vm0, %v3740_v46, 0.0 }
 0x376   : > { %1082 = vadd.xlane.f32.xlu0 %v1081_v48 }
 0x377   : > { %v4200_v50 = vpop.eup %3741 }
 0x378   : > { %v3744_v52 = vpop.eup %3743  ;;  %v979_v53 = vsel %vm963_vm0, %v4200_v50, 0.0 }
 0x379   : > { %980 = vadd.xlane.f32.xlu1 %v979_v53  ;;  %v976_v54 = vsel %vm963_vm0, %v3744_v52, 0.0 }
 0x37a   : > { %977 = vadd.xlane.f32.xlu0 %v976_v54 }
 0x402   : > { %v1086_v20 = vpop.xlane.xlu1 %1085 }
 0x403   : > { %3745 = vrcp.f32 %v1086_v20  ;;  %v1083_v21 = vpop.xlane.xlu0 %1082 }
 0x404   : > { %3747 = vrcp.f32 %v1083_v21 }
 0x406   : > { %v981_v23 = vpop.xlane.xlu1 %980 }
 0x407   : > { %v978_v22 = vpop.xlane.xlu0 %977 }
 0x408   : > { %3749 = vrcp.f32 %v978_v22 }
 0x409   : > { %3751 = vrcp.f32 %v981_v23 }
 0x40d   : > { %v3746_v24 = vpop.eup %3745 }
 0x40e   : > { %v3748_v25 = vpop.eup %3747  ;;  %v1090_v27 = vmul.f32 %v3746_v24, %v4195_v45 }
 0x40f   : > { %v1089_v26 = vmul.f32 %v3748_v25, %v3740_v46 }
 0x411   : > { %3050 = vmatprep.mubr.msk.f32.mxu0 %vm963_vm0, %v1089_v26 }
 0x412   : > { %v3750_v28 = vpop.eup %3749  ;;  %3051 = vmatmul.mubr.msk.f32.vlgmr.msra.gmra.mrb[4].mxu0 %vm963_vm0, %v1090_v27 }
 0x413   : > { %3412 = vmatpush3.bf16.msra.mxu0 %v4174_v7  ;;  %v984_v29 = vmul.f32 %v3750_v28, %v3744_v52  ;;  %v3752_v30 = vpop.eup %3751  ;;  %v2775_v7 = vld [vmem:[%s4467_s8] ss:$0 sm:$0xff]  ;;  %v1400_v52 = vld [vmem:[#allocation4 + $0x18] sm:$0xff] }
 0x414   : > { %v985_v31 = vmul.f32 %v3752_v30, %v4200_v50  ;;  %3446 = vmatprep.subr.bf16.mxu0 %v3445_v36  ;;  %v1399_v50 = vld [vmem:[#allocation4 + $0x10] sm:$0xff] }
 0x415   : > { %3057 = vmatprep.mubr.msk.f32.mxu0 %vm963_vm0, %v984_v29  ;;  %v3449_v53 = vpack.c.bf16 %v1400_v52, %v1399_v50  ;;  %v1519_v50 = vld [vmem:[#allocation6 + $0x30] sm:$0xff]  ;;  %v1520_v52 = vld [vmem:[#allocation6 + $0x38] sm:$0xff] }
 0x41a   : > { %3058 = vmatmul.mubr.msk.f32.vlgmr.msra.gmra.mrb[4].mxu0 %vm963_vm0, %v985_v31  ;;  %v2776_v31 = vld [vmem:[%s4468_s9] ss:$0 sm:$0xff] }
 0x41b   : > { %3448 = vmatpush3.bf16.msra.mxu0 %v3445_v36 }
 0x41c   : > { %3450 = vmatprep.subr.bf16.mxu0 %v3449_v53 }
 0x41f   : > { %3452 = vmatpush3.bf16.msra.mxu0 %v3449_v53  ;;  %v3489_v53 = vpack.c.bf16 %v1520_v52, %v1519_v50 }
 0x4ed   : > { %v3059_v32 = vpop.f32.mrb[4].mxu0 }
 0x4ee   : > { %v1244_v33 = vpop.f32.mrb[5].mxu0 }
 0x4ef   : > { %3092 = vmatprep.mubr.f32.mxu1 %v1244_v33 }
 0x4f0   : > { %3093 = vmatmul.mubr.f32.vlgmr.msra.gmra.mrb[6].mxu1 %v3059_v32 }
 0x4f1   : > { %3480 = vmatpush3.bf16.msra.mxu1 %v3477_v12 }
 0x5c3   : > { %v3094_v37 = vpop.f32.mrb[6].mxu1 }
 0x5c4   : > { %v1348_v38 = vadd.f32 %v3094_v37, %v2775_v7  ;;  %v1342_v0 = vpop.f32.mrb[7].mxu1 }
 0x5c5   : > { %v1343_v42 = vadd.f32 %v2775_v7, %v1342_v0  ;;  %v1515_v0 = vld [vmem:[#allocation6 + $0x10] sm:$0xff] }
 0x5c6   : > { %v4264_v45 = vadd.f32 %v1348_v38, %v4136_v39  ;;  %v1401_v39 = vld [vmem:[#allocation4 + $0x20] sm:$0xff] }
 0x5c7   : > { %v4267_v46 = vadd.f32 %v1343_v42, %v4138_v40  ;;  %v1402_v40 = vld [vmem:[#allocation4 + $0x28] sm:$0xff]  ;;  %v1516_v42 = vld [vmem:[#allocation6 + $0x18] sm:$0xff] }
 0x5c8   : > { %1357 = vadd.xlane.f32.xlu1 %v4264_v45  ;;  %v1362_v47 = vmul.f32 %v4264_v45, %v4264_v45  ;;  %v3453_v54 = vpack.c.bf16 %v1402_v40, %v1401_v39  ;;  %v1521_v39 = vld [vmem:[#allocation6 + $0x40] sm:$0xff]  ;;  %v1522_v40 = vld [vmem:[#allocation6 + $0x48] sm:$0xff] }
 0x5c9   : > { %1355 = vadd.xlane.f32.xlu0 %v4267_v46  ;;  %v1361_v48 = vmul.f32 %v4267_v46, %v4267_v46 }
 0x5ca   : > { %3454 = vmatprep.subr.bf16.mxu0 %v3453_v54 }
 0x5cb   : > { %3456 = vmatpush3.bf16.msra.mxu0 %v3453_v54  ;;  %v3493_v54 = vpack.c.bf16 %v1522_v40, %v1521_v39 }
 0x5cc   : > { %1365 = vadd.xlane.f32.xlu1 %v1362_v47  ;;  %3458 = vmatprep.subr.bf16.mxu0 %v3457_v58  ;;  %v1518_v47 = vld [vmem:[#allocation6 + $0x28] sm:$0xff] }
 0x5cd   : > { %1363 = vadd.xlane.f32.xlu0 %v1361_v48 }
 0x5cf   : > { %3460 = vmatpush3.bf16.msra.mxu0 %v3457_v58  ;;  %v3497_v58 = vpack.c.bf16 %v1524_v57, %v1523_v56 }
 0x5d0   : > { %3462 = vmatprep.subr.bf16.mxu0 %v3461_v62 }
 0x5d3   : > { %3464 = vmatpush3.bf16.msra.mxu0 %v3461_v62  ;;  %v1527_v62 = vld [vmem:[#allocation6 + $0x70] sm:$0xff] }
 0x5d4   : > { %3466 = vmatprep.subr.bf16.mxu0 %v3465_v2 }
 0x5d7   : > { %3468 = vmatpush3.bf16.msra.mxu0 %v3465_v2  ;;  %v3505_v2 = vpack.c.bf16 %v1528_v63, %v1527_v62  ;;  %v1670_v62 = vld [vmem:[#allocation2 + $0x1e0] sm:$0xff] }
 0x5d8   : > { %3470 = vmatprep.subr.bf16.mxu0 %v3469_v5 }
 0x5db   : > { %3472 = vmatpush3.bf16.msra.mxu0 %v3469_v5 }
 0x5dc   : > { %3474 = vmatprep.subr.bf16.mxu0 %v3473_v9 }
 0x5df   : > { %3476 = vmatpush3.bf16.msra.mxu0 %v3473_v9 }
 0x655   : > { %v1358_v13 = vpop.xlane.xlu1 %1357 }
 0x656   : > { %v1360_v14 = vmul.f32 0.03125, %v1358_v13  ;;  %v1356_v15 = vpop.xlane.xlu0 %1355 }
 0x657   : > { %v1359_v16 = vmul.f32 0.03125, %v1356_v15 }
 0x658   : > { %v1370_v19 = vmul.f32 %v1360_v14, %v1360_v14  ;;  %v1374_v28 = vsub.f32 %v4264_v45, %v1360_v14  ;;  %v3481_v45 = vpack.c.bf16 %v1516_v42, %v1515_v0  ;;  %v1663_v0 = vld [vmem:[#allocation2 + $0x1a8] sm:$0xff]  ;;  %v1664_v42 = vld [vmem:[#allocation2 + $0x1b0] sm:$0xff] }
 0x659   : > { %v1366_v17 = vpop.xlane.xlu1 %1365  ;;  %v1369_v22 = vmul.f32 %v1359_v16, %v1359_v16  ;;  %v1373_v30 = vsub.f32 %v4267_v46, %v1359_v16  ;;  %v1517_v46 = vld [vmem:[#allocation6 + $0x20] sm:$0xff] }
 0x65a   : > { %v1368_v20 = vmul.f32 0.03125, %v1366_v17  ;;  %v1364_v21 = vpop.xlane.xlu0 %1363  ;;  %3482 = vmatprep.subr.bf16.mxu1 %v3481_v45  ;;  %v3485_v48 = vpack.c.bf16 %v1518_v47, %v1517_v46  ;;  %v1667_v46 = vld [vmem:[#allocation2 + $0x1c8] sm:$0xff] }
 0x65b   : > { %v1367_v23 = vmul.f32 0.03125, %v1364_v21  ;;  %3484 = vmatpush3.bf16.msra.mxu1 %v3481_v45  ;;  %v3515_v47 = vpack.c.bf16 %v1667_v46, %v1664_v42  ;;  %v1701_v46 = vld [vmem:[#allocation2 + $0x2d8] sm:$0xff] }
 0x65c   : > { %v1372_v24 = vsub.f32 %v1368_v20, %v1370_v19  ;;  %3486 = vmatprep.subr.bf16.mxu1 %v3485_v48 }
 0x65d   : > { %v1371_v25 = vsub.f32 %v1367_v23, %v1369_v22 }
 0x65e   : > { %v1376_v26 = vadd.f32 1e-12, %v1372_v24 }
 0x65f   : > { %v1375_v27 = vadd.f32 1e-12, %v1371_v25  ;;  %3488 = vmatpush3.bf16.msra.mxu1 %v3485_v48  ;;  %v2779_v48 = vld [vmem:[%s4473_s14] ss:$0 sm:$0xff] }
 0x660   : > { %3753 = vrsqrt.f32 %v1376_v26  ;;  %3490 = vmatprep.subr.bf16.mxu1 %v3489_v53 }
 0x661   : > { %3755 = vrsqrt.f32 %v1375_v27 }
 0x663   : > { %3492 = vmatpush3.bf16.msra.mxu1 %v3489_v53 }
 0x664   : > { %3494 = vmatprep.subr.bf16.mxu1 %v3493_v54 }
 0x667   : > { %3496 = vmatpush3.bf16.msra.mxu1 %v3493_v54 }
 0x668   : > { %3498 = vmatprep.subr.bf16.mxu1 %v3497_v58 }
 0x66a   : > { %v3754_v29 = vpop.eup %3753 }
 0x66b   : > { %v3756_v32 = vpop.eup %3755  ;;  %v1380_v33 = vmul.f32 %v3754_v29, %v1374_v28  ;;  %3500 = vmatpush3.bf16.msra.mxu1 %v3497_v58  ;;  %v1659_v28 = vld [vmem:[#allocation2 + $0x188] sm:$0xff]  ;;  %v1662_v29 = vld [vmem:[#allocation2 + $0x1a0] sm:$0xff] }
 0x66c   : > { %v1379_v34 = vmul.f32 %v3756_v32, %v1373_v30  ;;  %3502 = vmatprep.subr.bf16.mxu1 %v3501_v61  ;;  %v1658_v30 = vld [vmem:[#allocation2 + $0x180] sm:$0xff]  ;;  %v1661_v32 = vld [vmem:[#allocation2 + $0x198] sm:$0xff]  ;;  %v1671_v58 = vld [vmem:[#allocation2 + $0x1e8] sm:$0xff] }
 0x66d   : > { %v1388_v36 = vmul.f32 %v2776_v31, %v1380_v33  ;;  %v1665_v33 = vld [vmem:[#allocation2 + $0x1b8] sm:$0xff] }
 0x66e   : > { %v1387_v7 = vmul.f32 %v2776_v31, %v1379_v34  ;;  %v3509_v31 = vpack.c.bf16 %v1662_v29, %v1659_v28  ;;  %v1668_v34 = vld [vmem:[#allocation2 + $0x1d0] sm:$0xff]  ;;  %v1691_v29 = vld [vmem:[#allocation2 + $0x288] sm:$0xff] }
 0x66f   : > { %v4285_v38 = vadd.f32 %v2777_v35, %v1388_v36  ;;  %3504 = vmatpush3.bf16.msra.mxu1 %v3501_v61  ;;  %v3513_v36 = vpack.c.bf16 %v1668_v34, %v1665_v33  ;;  %v1669_v61 = vld [vmem:[#allocation2 + $0x1d8] sm:$0xff]  ;;  %v1688_v28 = vld [vmem:[#allocation2 + $0x270] sm:$0xff]  ;;  %v1698_v33 = vld [vmem:[#allocation2 + $0x2c0] sm:$0xff] }
 0x670   : > { %v4283_v37 = vadd.f32 %v2777_v35, %v1387_v7  ;;  %3506 = vmatprep.subr.bf16.mxu1 %v3505_v2  ;;  %v3511_v35 = vpack.c.bf16 %v1661_v32, %v1658_v30  ;;  %v1660_v7 = vld [vmem:[#allocation2 + $0x190] sm:$0xff]  ;;  %3510 = vmatprep.subr.bf16.mxu0 %v3509_v31  ;;  %v3545_v63 = vpack.c.bf16 %v1669_v61, %v1666_v60  ;;  %v1695_v32 = vld [vmem:[#allocation2 + $0x2a8] sm:$0xff]  ;;  %v1690_v34 = vld [vmem:[#allocation2 + $0x280] sm:$0xff] }
 0x671   : > { %v3541_v45 = vpack.c.bf16 %v1663_v0, %v1660_v7  ;;  %v3531_v31 = vpack.c.bf16 %v1691_v29, %v1688_v28  ;;  %v1694_v7 = vld [vmem:[#allocation2 + $0x2a0] sm:$0xff]  ;;  %v1697_v0 = vld [vmem:[#allocation2 + $0x2b8] sm:$0xff] }
 0x672   : > { %3127 = vmatprep.mubr.f32.mxu0 %v4283_v37 }
 0x673   : > { %3128 = vmatmul.mubr.f32.vlgmr.msra.gmra.mrb[6].mxu0 %v4285_v38  ;;  %3508 = vmatpush3.bf16.msra.mxu1 %v3505_v2 }
 0x674   : > { %1788 = vmatprep.mubr.f32.mxu0 %v3900_v55  ;;  %3512 = vmatpush1.bf16.msra.mxu0 %v3511_v35  ;;  %v3533_v35 = vpack.c.bf16 %v1698_v33, %v1695_v32 }
 0x675   : > { %3514 = vmatprep.subr.bf16.mxu0 %v3513_v36  ;;  %3542 = vmatprep.subr.bf16.mxu1 %v3541_v45  ;;  %v1693_v36 = vld [vmem:[#allocation2 + $0x298] sm:$0xff] }
 0x676   : > { %v3561_v42 = vpack.c.bf16 %v1693_v36, %v1690_v34 }
 0x678   : > { %3516 = vmatpush1.bf16.msra.mxu0 %v3515_v47  ;;  %v1704_v47 = vld [vmem:[#allocation2 + $0x2f0] sm:$0xff] }
 0x746   : > { %v3129_v4 = vpop.f32.mrb[6].mxu0 }
 0x747   : > { %v1492_v5 = vadd.f32 %v3129_v4, %v2778_v3  ;;  %v1486_v6 = vpop.f32.mrb[7].mxu0  ;;  %v1680_v4 = vld [vmem:[#allocation2 + $0x230] sm:$0xff] }
 0x748   : > { %v1487_v8 = vadd.f32 %v2778_v3, %v1486_v6  ;;  %v1677_v3 = vld [vmem:[#allocation2 + $0x218] sm:$0xff] }
 0x749   : > { %v1498_v9 = vmul.f32 0.044715, %v1492_v5  ;;  %v1496_v25 = vmul.f32 0.5, %v1492_v5  ;;  %v3521_v6 = vpack.c.bf16 %v1680_v4, %v1677_v3 }
 0x74a   : > { %v1497_v10 = vmul.f32 0.044715, %v1487_v8  ;;  %v1495_v23 = vmul.f32 0.5, %v1487_v8 }
 0x74b   : > { %v1500_v11 = vmul.f32 %v1498_v9, %v1492_v5  ;;  %v1676_v9 = vld [vmem:[#allocation2 + $0x210] sm:$0xff] }
 0x74c   : > { %v1499_v12 = vmul.f32 %v1497_v10, %v1487_v8  ;;  %v1679_v10 = vld [vmem:[#allocation2 + $0x228] sm:$0xff] }
 0x74d   : > { %v1502_v13 = vmul.f32 %v1500_v11, %v1492_v5 }
 0x74e   : > { %v1501_v14 = vmul.f32 %v1499_v12, %v1487_v8  ;;  %v3523_v12 = vpack.c.bf16 %v1679_v10, %v1676_v9 }
 0x74f   : > { %v1504_v15 = vadd.f32 %v1502_v13, %v1492_v5  ;;  %v1672_v5 = vld [vmem:[#allocation2 + $0x1f0] sm:$0xff]  ;;  %v1683_v13 = vld [vmem:[#allocation2 + $0x248] sm:$0xff] }
 0x750   : > { %v1503_v16 = vadd.f32 %v1501_v14, %v1487_v8  ;;  %v1675_v8 = vld [vmem:[#allocation2 + $0x208] sm:$0xff]  ;;  %v1686_v14 = vld [vmem:[#allocation2 + $0x260] sm:$0xff] }
 0x751   : > { %v1506_v17 = vmul.f32 0.7978846, %v1504_v15  ;;  %v3549_v11 = vpack.c.bf16 %v1675_v8, %v1672_v5  ;;  %v1678_v15 = vld [vmem:[#allocation2 + $0x220] sm:$0xff] }
 0x752   : > { %v1505_v19 = vmul.f32 0.7978846, %v1503_v16  ;;  %v3525_v16 = vpack.c.bf16 %v1686_v14, %v1683_v13  ;;  %v2780_v14 = vld [vmem:[%s4500_s16] ss:$0 sm:$0xff] }
 0x753   : > { %3757 = vtanh.f32 %v1506_v17  ;;  %v1681_v17 = vld [vmem:[#allocation2 + $0x238] sm:$0xff] }
 0x754   : > { %3759 = vtanh.f32 %v1505_v19  ;;  %v1682_v19 = vld [vmem:[#allocation2 + $0x240] sm:$0xff] }
 0x75d   : > { %v3758_v20 = vpop.eup %3757 }
 0x75e   : > { %v3760_v21 = vpop.eup %3759  ;;  %v1510_v22 = vadd.f32 1.0, %v3758_v20  ;;  %v1685_v20 = vld [vmem:[#allocation2 + $0x258] sm:$0xff] }
 0x75f   : > { %v1509_v24 = vadd.f32 1.0, %v3760_v21  ;;  %v3553_v21 = vpack.c.bf16 %v1681_v17, %v1678_v15 }
 0x760   : > { %v1512_v27 = vmul.f32 %v1510_v22, %v1496_v25  ;;  %v3527_v22 = vpack.c.bf16 %v1685_v20, %v1682_v19  ;;  %v1684_v25 = vld [vmem:[#allocation2 + $0x250] sm:$0xff] }
 0x761   : > { %v1511_v26 = vmul.f32 %v1509_v24, %v1495_v23  ;;  %v1689_v23 = vld [vmem:[#allocation2 + $0x278] sm:$0xff]  ;;  %v1692_v24 = vld [vmem:[#allocation2 + $0x290] sm:$0xff] }
 0x763   : > { %3162 = vmatprep.mubr.f32.mxu1 %v1511_v26  ;;  %v3529_v26 = vpack.c.bf16 %v1692_v24, %v1689_v23 }
 0x764   : > { %3163 = vmatmul.mubr.f32.vlgmr.msra.gmra.mrb[8].mxu1 %v1512_v27  ;;  %v1687_v27 = vld [vmem:[#allocation2 + $0x268] sm:$0xff] }
 0x765   : > { %3544 = vmatpush3.bf16.msra.mxu1 %v3541_v45  ;;  %v3557_v30 = vpack.c.bf16 %v1687_v27, %v1684_v25  ;;  %v3535_v45 = vpack.c.bf16 %v1697_v0, %v1694_v7 }
 0x766   : > { %3546 = vmatprep.subr.bf16.mxu1 %v3545_v63 }
 0x769   : > { %3548 = vmatpush3.bf16.msra.mxu1 %v3545_v63 }
 0x76a   : > { %3550 = vmatprep.subr.bf16.mxu1 %v3549_v11 }
 0x76d   : > { %3552 = vmatpush3.bf16.msra.mxu1 %v3549_v11 }
 0x76e   : > { %3554 = vmatprep.subr.bf16.mxu1 %v3553_v21 }
 0x771   : > { %3556 = vmatpush3.bf16.msra.mxu1 %v3553_v21 }
 0x772   : > { %3558 = vmatprep.subr.bf16.mxu1 %v3557_v30 }
 0x775   : > { %3560 = vmatpush3.bf16.msra.mxu1 %v3557_v30 }
 0x776   : > { %3562 = vmatprep.subr.bf16.mxu1 %v3561_v42 }
 0x779   : > { %3564 = vmatpush3.bf16.msra.mxu1 %v3561_v42 }
 0x837   : > { %v3164_v50 = vpop.f32.mrb[8].mxu1 }
 0x838   : > { %v1602_v52 = vpop.f32.mrb[9].mxu1  ;;  %v1608_v53 = vadd.f32 %v3164_v50, %v2779_v48  ;;  %v3537_v50 = vpack.c.bf16 %v1704_v47, %v1701_v46 }
 0x839   : > { %v1603_v39 = vadd.f32 %v2779_v48, %v1602_v52  ;;  %v1696_v48 = vld [vmem:[#allocation2 + $0x2b0] sm:$0xff]  ;;  %v1699_v52 = vld [vmem:[#allocation2 + $0x2c8] sm:$0xff] }
 0x83a   : > { %v4300_v54 = vadd.f32 %v1608_v53, %v4285_v38  ;;  %v1673_v38 = vld [vmem:[#allocation2 + $0x1f8] sm:$0xff]  ;;  %v1700_v53 = vld [vmem:[#allocation2 + $0x2d0] sm:$0xff] }
 0x83b   : > { %v4297_v40 = vadd.f32 %v1603_v39, %v4283_v37  ;;  %v3517_v37 = vpack.c.bf16 %v1674_v59, %v1671_v58  ;;  %v3519_v2 = vpack.c.bf16 %v1673_v38, %v1670_v62  ;;  %v1703_v39 = vld [vmem:[#allocation2 + $0x2e8] sm:$0xff]  ;;  %v1702_v58 = vld [vmem:[#allocation2 + $0x2e0] sm:$0xff]  ;;  %v1705_v59 = vld [vmem:[#allocation2 + $0x2f8] sm:$0xff] }
 0x83c   : > { %v1622_v57 = vmul.f32 %v4300_v54, %v4300_v54  ;;  %v3569_v60 = vpack.c.bf16 %v1705_v59, %v1702_v58 }
 0x83d   : > { %1615 = vadd.xlane.f32.xlu0 %v4297_v40  ;;  %v1621_v56 = vmul.f32 %v4297_v40, %v4297_v40  ;;  %3518 = vmatprep.subr.bf16.mxu0 %v3517_v37 }
 0x83e   : > { %3520 = vmatpush1.bf16.msra.mxu0 %v3519_v2 }
 0x83f   : > { %1623 = vadd.xlane.f32.xlu1 %v1621_v56  ;;  %3522 = vmatprep.subr.bf16.mxu0 %v3521_v6  ;;  %v3565_v56 = vpack.c.bf16 %v1699_v52, %v1696_v48 }
 0x841   : > { %1617 = vadd.xlane.f32.xlu0 %v4300_v54  ;;  %3566 = vmatprep.subr.bf16.mxu1 %v3565_v56 }
 0x842   : > { %3524 = vmatpush1.bf16.msra.mxu0 %v3523_v12  ;;  %3568 = vmatpush3.bf16.msra.mxu1 %v3565_v56 }
 0x843   : > { %1625 = vadd.xlane.f32.xlu1 %v1622_v57  ;;  %3526 = vmatprep.subr.bf16.mxu0 %v3525_v16  ;;  %v3539_v57 = vpack.c.bf16 %v1703_v39, %v1700_v53  ;;  %v2781_v16 = vld [vmem:[%s4501_s17] ss:$0 sm:$0xff] }
 0x844   : > { %3570 = vmatprep.subr.bf16.mxu1 %v3569_v60 }
 0x846   : > { %3528 = vmatpush1.bf16.msra.mxu0 %v3527_v22  ;;  %3572 = vmatpush3.bf16.msra.mxu1 %v3569_v60 }
 0x847   : > { %3530 = vmatprep.subr.bf16.mxu0 %v3529_v26 }
 0x84a   : > { %3532 = vmatpush1.bf16.msra.mxu0 %v3531_v31 }
 0x84b   : > { %3534 = vmatprep.subr.bf16.mxu0 %v3533_v35 }
 0x84e   : > { %3536 = vmatpush1.bf16.msra.mxu0 %v3535_v45 }
 0x84f   : > { %3538 = vmatprep.subr.bf16.mxu0 %v3537_v50 }
 0x852   : > { %3540 = vmatpush1.bf16.msra.mxu0 %v3539_v57 }
 0x8ca   : > { %v1616_v37 = vpop.xlane.xlu0 %1615 }
 0x8cb   : > { %v1619_v61 = vmul.f32 0.03125, %v1616_v37 }
 0x8cc   : > { %v1624_v62 = vpop.xlane.xlu1 %1623 }
 0x8cd   : > { %v1629_v38 = vmul.f32 %v1619_v61, %v1619_v61  ;;  %v1627_v63 = vmul.f32 0.03125, %v1624_v62  ;;  %v1633_v12 = vsub.f32 %v4297_v40, %v1619_v61 }
 0x8ce   : > { %v1618_v2 = vpop.xlane.xlu0 %1617 }
 0x8cf   : > { %v1631_v3 = vsub.f32 %v1627_v63, %v1629_v38  ;;  %v1620_v4 = vmul.f32 0.03125, %v1618_v2 }
 0x8d0   : > { %v1626_v5 = vpop.xlane.xlu1 %1625 }
 0x8d1   : > { %v1635_v6 = vadd.f32 1e-12, %v1631_v3  ;;  %v1630_v8 = vmul.f32 %v1620_v4, %v1620_v4  ;;  %v1628_v9 = vmul.f32 0.03125, %v1626_v5  ;;  %v1634_v17 = vsub.f32 %v4300_v54, %v1620_v4  ;;  %v2782_v54 = vld [vmem:[%s4465_s6 + $0x3] sm:$0x7] }
 0x8d2   : > { %v1712_v24 = vrot.slane %v2782_v54, %v4148_v41  ;;  %v1716_v25 = vrot.slane %v2782_v54, %v4155_v44 }
 0x8d3   : > { %3761 = vrsqrt.f32 %v1635_v6  ;;  %v1632_v10 = vsub.f32 %v1628_v9, %v1630_v8 }
 0x8d5   : > { %v1636_v11 = vadd.f32 1e-12, %v1632_v10 }
 0x8d7   : > { %3763 = vrsqrt.f32 %v1636_v11 }
 0x8dd   : > { %v3762_v13 = vpop.eup %3761 }
 0x8de   : > { %v1639_v15 = vmul.f32 %v3762_v13, %v1633_v12 }
 0x8e0   : > { %v1647_v19 = vmul.f32 %v2780_v14, %v1639_v15 }
 0x8e1   : > { %v3764_v20 = vpop.eup %3763 }
 0x8e2   : > { %v4316_v21 = vadd.f32 %v2781_v16, %v1647_v19  ;;  %v1640_v22 = vmul.f32 %v3764_v20, %v1634_v17 }
 0x8e4   : > { %1789 = vmatmul.mubr.f32.vlgmr.msra.gmra.mrb[8].mxu0 %v4316_v21  ;;  %3197 = vmatprep.mubr.f32.mxu1 %v4316_v21  ;;  %v1648_v40 = vmul.f32 %v2780_v14, %v1640_v22 }
 0x8e5   : > { %1794 = vmatprep.mubr.f32.mxu0 %v3900_v55  ;;  %v1720_v55 = vrot.slane %v2782_v54, %v715_v43 }
 0x8e6   : > { %v4321_v23 = vadd.f32 %v2781_v16, %v1648_v40 }
 0x8e8   : > { %1795 = vmatmul.mubr.f32.gmra.mrb[10].mxu0 %v4321_v23  ;;  %3198 = vmatmul.mubr.f32.vlgmr.msra.gmra.mrb[10].mxu1 %v4321_v23 }
 0x9b7   : > { %v1790_v26 = vpop.f32.mrb[8].mxu0 }
 0x9b8   : > { %v1791_v27 = vadd.f32 %v1790_v26, %v1712_v24  ;;  %v1792_v28 = vpop.f32.mrb[9].mxu0 }
 0x9b9   : > { %v1793_v30 = vadd.f32 %v1792_v28, %v1716_v25  ;;  %v2787_v28 = vld [vmem:[%s4466_s7 + $0x80] sm:$0xff] }
 0x9ba   : > { %v1876_v29 = vmul.f32 0.25, %v1791_v27 }
 0x9bb   : > { %v1796_v31 = vpop.f32.mrb[10].mxu0  ;;  %v3199_v32 = vpop.f32.mrb[10].mxu1  ;;  %v1878_v41 = vmul.f32 %v1793_v30, %v4164_v49  ;;  %v1979_v44 = vmul.f32 %v1793_v30, %v4168_v51 }
 0x9bc   : > { %v1873_v33 = vadd.f32 %v3199_v32, %v1720_v55  ;;  %v1798_v34 = vpop.f32.mrb[11].mxu0  ;;  %v1867_v35 = vpop.f32.mrb[11].mxu1  ;;  %3204 = vmatprep.mubr.f32.mxu1 %v1876_v29  ;;  %3211 = vmatprep.mubr.f32.mxu0 %v1876_v29  ;;  %v1797_v53 = vadd.f32 %v1796_v31, %v1712_v24 }
 0x9bd   : > { %v1799_v36 = vadd.f32 %v1798_v34, %v1716_v25  ;;  %v1868_v7 = vadd.f32 %v1867_v35, %v1720_v55  ;;  %v2788_v55 = vld [vmem:[%s4466_s7 + $0x88] sm:$0xff] }
 0x9be   : > { %v1881_v0 = vmul.f32 %v1873_v33, %v4164_v49  ;;  %v1982_v1 = vmul.f32 %v1873_v33, %v4168_v51  ;;  %v1877_v39 = vmul.f32 0.25, %v1797_v53  ;;  %v3589_v32 = vpack.c.bf16 %v2788_v55, %v2787_v28  ;;  %v2798_v53 = vld [vmem:[%s4466_s7 + $0xd8] sm:$0xff] }
 0x9bf   : > { %v1879_v43 = vmul.f32 %v1799_v36, %v4164_v49  ;;  %v1980_v42 = vmul.f32 %v1799_v36, %v4168_v51  ;;  %v1880_v45 = vmul.f32 %v1868_v7, %v4164_v49  ;;  %v1981_v46 = vmul.f32 %v1868_v7, %v4168_v51  ;;  %v2789_v36 = vld [vmem:[%s4466_s7 + $0x90] sm:$0xff]  ;;  %v2790_v7 = vld [vmem:[%s4466_s7 + $0x98] sm:$0xff] }
 0x9c0   : > { %v2406_v28 = vld [vmem:[#allocation4 + $0xf8] sm:$0xff] }
 0x9c1   : > { %v3573_v47 = vpack.c.bf16 %v1879_v43, %v1878_v41  ;;  %v3577_v48 = vpack.c.bf16 %v1980_v42, %v1979_v44  ;;  %v3581_v50 = vpack.c.bf16 %v1982_v1, %v1981_v46  ;;  %v4340_v52 = vpack.c.bf16 %v1881_v0, %v1880_v45  ;;  %v2791_v0 = vld [vmem:[%s4466_s7 + $0xa0] sm:$0xff]  ;;  %v2792_v1 = vld [vmem:[%s4466_s7 + $0xa8] sm:$0xff]  ;;  %v2793_v42 = vld [vmem:[%s4466_s7 + $0xb0] sm:$0xff] }
 0x9c2   : > { %v3593_v44 = vpack.c.bf16 %v2790_v7, %v2789_v36  ;;  %v3597_v43 = vpack.c.bf16 %v2792_v1, %v2791_v0  ;;  %v2794_v45 = vld [vmem:[%s4466_s7 + $0xb8] sm:$0xff] }
 0x9c3   : > { %3574 = vmatprep.subr.bf16.mxu1 %v3573_v47  ;;  %3578 = vmatprep.subr.bf16.mxu0 %v3577_v48  ;;  %v3601_v46 = vpack.c.bf16 %v2794_v45, %v2793_v42 }
 0x9c4   : > { %3576 = vmatpush3.bf16.xpose.msra.mxu1 %v3573_v47  ;;  %3580 = vmatpush3.bf16.xpose.msra.mxu0 %v3577_v48  ;;  %v2795_v47 = vld [vmem:[%s4466_s7 + $0xc0] sm:$0xff]  ;;  %v2796_v48 = vld [vmem:[%s4466_s7 + $0xc8] sm:$0xff] }
 0x9c5   : > { %3582 = vmatprep.subr.bf16.mxu0 %v3581_v50 }
 0x9cb   : > { %3205 = vmatmul.mubr.f32.vlgmr.msra.gmra.mrb[12].mxu1 %v1877_v39  ;;  %3212 = vmatmul.mubr.f32.vlgmr.msra.gmra.mrb[12].mxu0 %v1877_v39 }
 0x9cc   : > { %3584 = vmatpush3.bf16.msra.mxu0 %v3581_v50  ;;  %v3605_v50 = vpack.c.bf16 %v2796_v48, %v2795_v47 }
 0x9cd   : > { %3586 = vmatprep.subr.bf16.mxu0 %v4340_v52 }
 0xa9e   : > { %v3206_v49 = vpop.f32.mrb[12].mxu1  ;;  %v3213_v56 = vpop.f32.mrb[12].mxu0 }
 0xa9f   : > { %v2055_v51 = vadd.f32 %v3213_v56, %v4185_v18  ;;  %v1948_v57 = vpop.f32.mrb[13].mxu1  ;;  %v2049_v58 = vpop.f32.mrb[13].mxu0  ;;  %v1954_v60 = vadd.f32 %v3206_v49, %v4185_v18  ;;  %v2799_v49 = vld [vmem:[%s4466_s7 + $0xe0] sm:$0xff]  ;;  %v2800_v56 = vld [vmem:[%s4466_s7 + $0xe8] sm:$0xff] }
 0xaa0   : > { %v2050_v59 = vadd.f32 %v4185_v18, %v2049_v58  ;;  %v1949_v61 = vadd.f32 %v4185_v18, %v1948_v57  ;;  %v2801_v57 = vld [vmem:[%s4466_s7 + $0xf0] sm:$0xff]  ;;  %v2802_v58 = vld [vmem:[%s4466_s7 + $0xf8] sm:$0xff] }
 0xaa1   : > { %v2061_v37 = vsel %vm963_vm0, %v2055_v51, -inf  ;;  %v1960_v38 = vsel %vm963_vm0, %v1954_v60, -inf }
 0xaa2   : > { %2062 = vmax.xlane.f32.xlu1 %v2061_v37  ;;  %v2058_v62 = vsel %vm963_vm0, %v2050_v59, -inf  ;;  %v1957_v63 = vsel %vm963_vm0, %v1949_v61, -inf }
 0xaa3   : > { %2059 = vmax.xlane.f32.xlu0 %v2058_v62  ;;  %v2392_v62 = vld [vmem:[#allocation4 + $0x88] sm:$0xff] }
 0xaa6   : > { %1961 = vmax.xlane.f32.xlu1 %v1960_v38 }
 0xaa7   : > { %1958 = vmax.xlane.f32.xlu0 %v1957_v63  ;;  %v2804_v63 = vld [vmem:[%s4467_s8 + $0x1] ss:$0 sm:$0xff] }
 0xb2f   : > { %v2063_v2 = vpop.xlane.xlu1 %2062 }
 0xb30   : > { %v2065_v3 = vsub.f32 %v2055_v51, %v2063_v2  ;;  %v2060_v4 = vpop.xlane.xlu0 %2059  ;;  %v3613_v51 = vpack.c.bf16 %v2800_v56, %v2799_v49  ;;  %v2808_v56 = vld [vmem:[%s4469_s10 + $0x1] ss:$0 sm:$0xff] }
 0xb31   : > { %v2064_v5 = vsub.f32 %v2050_v59, %v2060_v4  ;;  %v3617_v59 = vpack.c.bf16 %v2802_v58, %v2801_v57 }
 0xb32   : > { %v2068_v6 = vmul.f32 1.442695, %v2065_v3 }
 0xb33   : > { %v2066_v8 = vmul.f32 1.442695, %v2064_v5  ;;  %v1962_v9 = vpop.xlane.xlu1 %1961 }
 0xb34   : > { %3765 = vpow2.f32 %v2068_v6  ;;  %v1964_v10 = vsub.f32 %v1954_v60, %v1962_v9  ;;  %v1959_v18 = vpop.xlane.xlu0 %1958 }
 0xb35   : > { %3767 = vpow2.f32 %v2066_v8  ;;  %v1963_v11 = vsub.f32 %v1949_v61, %v1959_v18  ;;  %v2391_v61 = vld [vmem:[#allocation4 + $0x80] sm:$0xff]  ;;  %v2393_v18 = vld [vmem:[#allocation4 + $0x90] sm:$0xff] }
 0xb36   : > { %v1967_v12 = vmul.f32 1.442695, %v1964_v10  ;;  %v3621_v38 = vpack.c.bf16 %v2392_v62, %v2391_v61  ;;  %v2513_v62 = vld [vmem:[#allocation6 + $0xa0] sm:$0xff] }
 0xb37   : > { %v1965_v13 = vmul.f32 1.442695, %v1963_v11  ;;  %v2394_v11 = vld [vmem:[#allocation4 + $0x98] sm:$0xff] }
 0xb38   : > { %3769 = vpow2.f32 %v1967_v12  ;;  %3622 = vmatprep.subr.bf16.mxu1 %v3621_v38  ;;  %v3625_v12 = vpack.c.bf16 %v2394_v11, %v2393_v18  ;;  %v2521_v11 = vld [vmem:[#allocation6 + $0xe0] sm:$0xff] }
 0xb39   : > { %3771 = vpow2.f32 %v1965_v13  ;;  %3624 = vmatpush3.bf16.msra.mxu1 %v3621_v38  ;;  %v2514_v38 = vld [vmem:[#allocation6 + $0xa8] sm:$0xff] }
 0xb3a   : > { %3626 = vmatprep.subr.bf16.mxu1 %v3625_v12 }
 0xb3d   : > { %3628 = vmatpush3.bf16.msra.mxu1 %v3625_v12  ;;  %v2522_v12 = vld [vmem:[#allocation6 + $0xe8] sm:$0xff] }
 0xb3e   : > { %v3766_v14 = vpop.eup %3765 }
 0xb3f   : > { %v3768_v15 = vpop.eup %3767  ;;  %v2073_v16 = vsel %vm963_vm0, %v3766_v14, 0.0 }
 0xb40   : > { %2074 = vadd.xlane.f32.xlu1 %v2073_v16  ;;  %v2070_v17 = vsel %vm963_vm0, %v3768_v15, 0.0 }
 0xb41   : > { %2071 = vadd.xlane.f32.xlu0 %v2070_v17  ;;  %v2399_v17 = vld [vmem:[#allocation4 + $0xc0] sm:$0xff] }
 0xb42   : > { %v3770_v19 = vpop.eup %3769 }
 0xb43   : > { %v3772_v20 = vpop.eup %3771  ;;  %v1972_v22 = vsel %vm963_vm0, %v3770_v19, 0.0 }
 0xb44   : > { %1973 = vadd.xlane.f32.xlu1 %v1972_v22  ;;  %v1969_v40 = vsel %vm963_vm0, %v3772_v20, 0.0 }
 0xb45   : > { %1970 = vadd.xlane.f32.xlu0 %v1969_v40  ;;  %v2402_v40 = vld [vmem:[#allocation4 + $0xd8] sm:$0xff] }
 0xbcd   : > { %v2075_v54 = vpop.xlane.xlu1 %2074 }
 0xbce   : > { %3773 = vrcp.f32 %v2075_v54  ;;  %v2072_v24 = vpop.xlane.xlu0 %2071 }
 0xbcf   : > { %3775 = vrcp.f32 %v2072_v24  ;;  %v2403_v24 = vld [vmem:[#allocation4 + $0xe0] sm:$0xff] }
 0xbd1   : > { %v1974_v26 = vpop.xlane.xlu1 %1973 }
 0xbd2   : > { %v1971_v25 = vpop.xlane.xlu0 %1970 }
 0xbd3   : > { %3777 = vrcp.f32 %v1971_v25  ;;  %v2404_v25 = vld [vmem:[#allocation4 + $0xe8] sm:$0xff] }
 0xbd4   : > { %3779 = vrcp.f32 %v1974_v26  ;;  %v3645_v26 = vpack.c.bf16 %v2404_v25, %v2403_v24 }
 0xbd8   : > { %v3774_v27 = vpop.eup %3773 }
 0xbd9   : > { %v3776_v29 = vpop.eup %3775  ;;  %v2079_v31 = vmul.f32 %v3774_v27, %v3766_v14  ;;  %v2397_v14 = vld [vmem:[#allocation4 + $0xb0] sm:$0xff] }
 0xbda   : > { %v2078_v30 = vmul.f32 %v3776_v29, %v3768_v15  ;;  %v2398_v15 = vld [vmem:[#allocation4 + $0xb8] sm:$0xff]  ;;  %v2405_v27 = vld [vmem:[#allocation4 + $0xf0] sm:$0xff]  ;;  %v2509_v29 = vld [vmem:[#allocation6 + $0x80] sm:$0xff] }
 0xbdb   : > { %v3633_v16 = vpack.c.bf16 %v2398_v15, %v2397_v14  ;;  %v3649_v55 = vpack.c.bf16 %v2406_v28, %v2405_v27  ;;  %v2810_v15 = vld [vmem:[%s4471_s12 + $0x1] ss:$0 sm:$0xff] }
 0xbdc   : > { %3218 = vmatprep.mubr.msk.f32.mxu0 %vm963_vm0, %v2078_v30  ;;  %v2510_v30 = vld [vmem:[#allocation6 + $0x88] sm:$0xff] }
 0xbdd   : > { %v3778_v33 = vpop.eup %3777  ;;  %3219 = vmatmul.mubr.msk.f32.vlgmr.msra.gmra.mrb[14].mxu0 %vm963_vm0, %v2079_v31  ;;  %v3653_v31 = vpack.c.bf16 %v2510_v30, %v2509_v29 }
 0xbde   : > { %3588 = vmatpush3.bf16.msra.mxu0 %v4340_v52  ;;  %v1977_v34 = vmul.f32 %v3778_v33, %v3772_v20  ;;  %v3780_v35 = vpop.eup %3779  ;;  %v2797_v52 = vld [vmem:[%s4466_s7 + $0xd0] sm:$0xff] }
 0xbdf   : > { %3590 = vmatprep.subr.bf16.mxu0 %v3589_v32  ;;  %v1978_v41 = vmul.f32 %v3780_v35, %v3770_v19  ;;  %v3609_v39 = vpack.c.bf16 %v2798_v53, %v2797_v52  ;;  %v2400_v19 = vld [vmem:[#allocation4 + $0xc8] sm:$0xff]  ;;  %v2401_v20 = vld [vmem:[#allocation4 + $0xd0] sm:$0xff]  ;;  %v2807_v52 = vld [vmem:[%s4468_s9 + $0x1] ss:$0 sm:$0xff] }
 0xbe0   : > { %3225 = vmatprep.mubr.msk.f32.mxu0 %vm963_vm0, %v1977_v34  ;;  %v3637_v22 = vpack.c.bf16 %v2400_v19, %v2399_v17  ;;  %v3641_v54 = vpack.c.bf16 %v2402_v40, %v2401_v20 }
 0xbe5   : > { %3226 = vmatmul.mubr.msk.f32.vlgmr.msra.gmra.mrb[14].mxu0 %vm963_vm0, %v1978_v41 }
 0xbe6   : > { %3592 = vmatpush3.bf16.msra.mxu0 %v3589_v32 }
 0xbe7   : > { %3594 = vmatprep.subr.bf16.mxu0 %v3593_v44 }
 0xbea   : > { %3596 = vmatpush3.bf16.msra.mxu0 %v3593_v44 }
 0xbeb   : > { %3598 = vmatprep.subr.bf16.mxu0 %v3597_v43 }
 0xbee   : > { %3600 = vmatpush3.bf16.msra.mxu0 %v3597_v43 }
 0xbef   : > { %3602 = vmatprep.subr.bf16.mxu0 %v3601_v46 }
 0xbf2   : > { %3604 = vmatpush3.bf16.msra.mxu0 %v3601_v46 }
 0xbf3   : > { %3606 = vmatprep.subr.bf16.mxu0 %v3605_v50 }
 0xbf6   : > { %3608 = vmatpush3.bf16.msra.mxu0 %v3605_v50 }
 0xbf7   : > { %3610 = vmatprep.subr.bf16.mxu0 %v3609_v39 }
 0xbfa   : > { %3612 = vmatpush3.bf16.msra.mxu0 %v3609_v39 }
 0xbfb   : > { %3614 = vmatprep.subr.bf16.mxu0 %v3613_v51 }
 0xbfe   : > { %3616 = vmatpush3.bf16.msra.mxu0 %v3613_v51 }
 0xbff   : > { %3618 = vmatprep.subr.bf16.mxu0 %v3617_v59 }
 0xc02   : > { %3620 = vmatpush3.bf16.msra.mxu0 %v3617_v59 }
 0xc03   : > { %3654 = vmatprep.subr.bf16.mxu0 %v3653_v31 }
 0xcb8   : > { %v3227_v60 = vpop.f32.mrb[14].mxu0 }
 0xcb9   : > { %v2233_v37 = vpop.f32.mrb[15].mxu0 }
 0xcba   : > { %3260 = vmatprep.mubr.f32.mxu0 %v2233_v37  ;;  %v2512_v37 = vld [vmem:[#allocation6 + $0x98] sm:$0xff] }
 0xcbb   : > { %3261 = vmatmul.mubr.f32.vlgmr.msra.gmra.mrb[16].mxu0 %v3227_v60  ;;  %v2511_v60 = vld [vmem:[#allocation6 + $0x90] sm:$0xff] }
 0xcbc   : > { %3656 = vmatpush3.bf16.msra.mxu0 %v3653_v31  ;;  %v3657_v61 = vpack.c.bf16 %v2512_v37, %v2511_v60 }
 0xcbe   : > { %3658 = vmatprep.subr.bf16.mxu0 %v3657_v61 }
 0xcc0   : > { %3660 = vmatpush3.bf16.msra.mxu0 %v3657_v61 }
 0xd8e   : > { %v3262_v2 = vpop.f32.mrb[16].mxu0 }
 0xd8f   : > { %v2339_v3 = vadd.f32 %v3262_v2, %v2804_v63  ;;  %v2333_v4 = vpop.f32.mrb[17].mxu0  ;;  %v2515_v2 = vld [vmem:[#allocation6 + $0xb0] sm:$0xff] }
 0xd90   : > { %v2334_v5 = vadd.f32 %v2804_v63, %v2333_v4  ;;  %v3661_v63 = vpack.c.bf16 %v2514_v38, %v2513_v62 }
 0xd91   : > { %v4412_v6 = vadd.f32 %v2339_v3, %v4321_v23  ;;  %v2395_v23 = vld [vmem:[#allocation4 + $0xa0] sm:$0xff]  ;;  %v2516_v3 = vld [vmem:[#allocation6 + $0xb8] sm:$0xff] }
 0xd92   : > { %v4415_v8 = vadd.f32 %v2334_v5, %v4316_v21  ;;  %v2396_v21 = vld [vmem:[#allocation4 + $0xa8] sm:$0xff]  ;;  %3662 = vmatprep.subr.bf16.mxu0 %v3661_v63  ;;  %v3665_v4 = vpack.c.bf16 %v2516_v3, %v2515_v2  ;;  %v2517_v5 = vld [vmem:[#allocation6 + $0xc0] sm:$0xff] }
 0xd93   : > { %2350 = vadd.xlane.f32.xlu1 %v4412_v6  ;;  %v2355_v9 = vmul.f32 %v4412_v6, %v4412_v6  ;;  %v3629_v13 = vpack.c.bf16 %v2396_v21, %v2395_v23  ;;  %3664 = vmatpush3.bf16.msra.mxu0 %v3661_v63  ;;  %v3677_v23 = vpack.c.bf16 %v2522_v12, %v2521_v11  ;;  %v2523_v21 = vld [vmem:[#allocation6 + $0xf0] sm:$0xff]  ;;  %v2815_v2 = vld [vmem:[%s4500_s16 + $0x1] ss:$0 sm:$0xff] }
 0xd94   : > { %2348 = vadd.xlane.f32.xlu0 %v4415_v8  ;;  %v2354_v10 = vmul.f32 %v4415_v8, %v4415_v8  ;;  %3666 = vmatprep.subr.bf16.mxu0 %v3665_v4 }
 0xd95   : > { %3630 = vmatprep.subr.bf16.mxu1 %v3629_v13 }
 0xd96   : > { %3632 = vmatpush3.bf16.msra.mxu1 %v3629_v13  ;;  %v2524_v13 = vld [vmem:[#allocation6 + $0xf8] sm:$0xff] }
 0xd97   : > { %2358 = vadd.xlane.f32.xlu1 %v2355_v9  ;;  %3634 = vmatprep.subr.bf16.mxu1 %v3633_v16  ;;  %v2519_v9 = vld [vmem:[#allocation6 + $0xd0] sm:$0xff]  ;;  %v3681_v14 = vpack.c.bf16 %v2524_v13, %v2523_v21 }
 0xd98   : > { %2356 = vadd.xlane.f32.xlu0 %v2354_v10  ;;  %v2520_v10 = vld [vmem:[#allocation6 + $0xd8] sm:$0xff]  ;;  %3668 = vmatpush3.bf16.msra.mxu0 %v3665_v4 }
 0xd99   : > { %v3673_v18 = vpack.c.bf16 %v2520_v10, %v2519_v9 }
 0xd9a   : > { %3636 = vmatpush3.bf16.msra.mxu1 %v3633_v16 }
 0xd9b   : > { %3638 = vmatprep.subr.bf16.mxu1 %v3637_v22 }
 0xd9e   : > { %3640 = vmatpush3.bf16.msra.mxu1 %v3637_v22 }
 0xd9f   : > { %3642 = vmatprep.subr.bf16.mxu1 %v3641_v54 }
 0xda2   : > { %3644 = vmatpush3.bf16.msra.mxu1 %v3641_v54 }
 0xda3   : > { %3646 = vmatprep.subr.bf16.mxu1 %v3645_v26 }
 0xda6   : > { %3648 = vmatpush3.bf16.msra.mxu1 %v3645_v26 }
 0xda7   : > { %3650 = vmatprep.subr.bf16.mxu1 %v3649_v55 }
 0xdaa   : > { %3652 = vmatpush3.bf16.msra.mxu1 %v3649_v55 }
 0xe20   : > { %v2351_v32 = vpop.xlane.xlu1 %2350 }
 0xe21   : > { %v2353_v33 = vmul.f32 0.03125, %v2351_v32  ;;  %v2349_v34 = vpop.xlane.xlu0 %2348 }
 0xe22   : > { %v2352_v35 = vmul.f32 0.03125, %v2349_v34 }
 0xe23   : > { %v2363_v7 = vmul.f32 %v2353_v33, %v2353_v33  ;;  %v2367_v47 = vsub.f32 %v4412_v6, %v2353_v33  ;;  %v2518_v6 = vld [vmem:[#allocation6 + $0xc8] sm:$0xff] }
 0xe24   : > { %v2359_v36 = vpop.xlane.xlu1 %2358  ;;  %v2362_v0 = vmul.f32 %v2352_v35, %v2352_v35  ;;  %v2366_v50 = vsub.f32 %v4415_v8, %v2352_v35  ;;  %v3669_v8 = vpack.c.bf16 %v2518_v6, %v2517_v5  ;;  %v2816_v5 = vld [vmem:[%s4501_s17 + $0x1] ss:$0 sm:$0xff] }
 0xe25   : > { %v2361_v41 = vmul.f32 0.03125, %v2359_v36  ;;  %v2357_v44 = vpop.xlane.xlu0 %2356 }
 0xe26   : > { %v2360_v1 = vmul.f32 0.03125, %v2357_v44  ;;  %3670 = vmatprep.subr.bf16.mxu0 %v3669_v8 }
 0xe27   : > { %v2365_v43 = vsub.f32 %v2361_v41, %v2363_v7  ;;  %3672 = vmatpush3.bf16.msra.mxu0 %v3669_v8  ;;  %v2812_v41 = vld [vmem:[%s4473_s14 + $0x1] ss:$0 sm:$0xff] }
 0xe28   : > { %v2364_v42 = vsub.f32 %v2360_v1, %v2362_v0  ;;  %3674 = vmatprep.subr.bf16.mxu0 %v3673_v18 }
 0xe29   : > { %v2369_v45 = vadd.f32 1e-12, %v2365_v43 }
 0xe2a   : > { %v2368_v46 = vadd.f32 1e-12, %v2364_v42 }
 0xe2b   : > { %3781 = vrsqrt.f32 %v2369_v45  ;;  %3676 = vmatpush3.bf16.msra.mxu0 %v3673_v18 }
 0xe2c   : > { %3783 = vrsqrt.f32 %v2368_v46  ;;  %3678 = vmatprep.subr.bf16.mxu0 %v3677_v23 }
 0xe2f   : > { %3680 = vmatpush3.bf16.msra.mxu0 %v3677_v23 }
 0xe30   : > { %3682 = vmatprep.subr.bf16.mxu0 %v3681_v14 }
 0xe33   : > { %3684 = vmatpush3.bf16.msra.mxu0 %v3681_v14 }
 0xe35   : > { %v3782_v48 = vpop.eup %3781 }
 0xe36   : > { %v3784_v53 = vpop.eup %3783  ;;  %v2373_v39 = vmul.f32 %v3782_v48, %v2367_v47 }
 0xe37   : > { %v2372_v49 = vmul.f32 %v3784_v53, %v2366_v50 }
 0xe38   : > { %v2381_v51 = vmul.f32 %v2807_v52, %v2373_v39 }
 0xe39   : > { %v2380_v57 = vmul.f32 %v2807_v52, %v2372_v49 }
 0xe3a   : > { %v4433_v59 = vadd.f32 %v2808_v56, %v2381_v51 }
 0xe3b   : > { %v4431_v58 = vadd.f32 %v2808_v56, %v2380_v57 }
 0xe3d   : > { %3295 = vmatprep.mubr.f32.mxu1 %v4431_v58 }
 0xe3e   : > { %3296 = vmatmul.mubr.f32.vlgmr.msra.gmra.mrb[14].mxu1 %v4433_v59 }
 0xf11   : > { %v3297_v16 = vpop.f32.mrb[14].mxu1 }
 0xf12   : > { %v2487_v17 = vadd.f32 %v3297_v16, %v2810_v15  ;;  %v2481_v19 = vpop.f32.mrb[15].mxu1 }
 0xf13   : > { %v2482_v20 = vadd.f32 %v2810_v15, %v2481_v19 }
 0xf14   : > { %v2493_v22 = vmul.f32 0.044715, %v2487_v17  ;;  %v2491_v35 = vmul.f32 0.5, %v2487_v17 }
 0xf15   : > { %v2492_v40 = vmul.f32 0.044715, %v2482_v20  ;;  %v2490_v33 = vmul.f32 0.5, %v2482_v20 }
 0xf16   : > { %v2495_v54 = vmul.f32 %v2493_v22, %v2487_v17 }
 0xf17   : > { %v2494_v24 = vmul.f32 %v2492_v40, %v2482_v20 }
 0xf18   : > { %v2497_v25 = vmul.f32 %v2495_v54, %v2487_v17 }
 0xf19   : > { %v2496_v26 = vmul.f32 %v2494_v24, %v2482_v20 }
 0xf1a   : > { %v2499_v27 = vadd.f32 %v2497_v25, %v2487_v17 }
 0xf1b   : > { %v2498_v28 = vadd.f32 %v2496_v26, %v2482_v20 }
 0xf1c   : > { %v2501_v55 = vmul.f32 0.7978846, %v2499_v27 }
 0xf1d   : > { %v2500_v29 = vmul.f32 0.7978846, %v2498_v28 }
 0xf1e   : > { %3785 = vtanh.f32 %v2501_v55 }
 0xf1f   : > { %3787 = vtanh.f32 %v2500_v29 }
 0xf28   : > { %v3786_v30 = vpop.eup %3785 }
 0xf29   : > { %v3788_v31 = vpop.eup %3787  ;;  %v2505_v32 = vadd.f32 1.0, %v3786_v30 }
 0xf2a   : > { %v2504_v34 = vadd.f32 1.0, %v3788_v31 }
 0xf2b   : > { %v2507_v7 = vmul.f32 %v2505_v32, %v2491_v35 }
 0xf2c   : > { %v2506_v36 = vmul.f32 %v2504_v34, %v2490_v33 }
 0xf2e   : > { %3330 = vmatprep.mubr.f32.mxu0 %v2506_v36 }
 0xf2f   : > { %3331 = vmatmul.mubr.f32.vlgmr.msra.gmra.mrb[18].mxu0 %v2507_v7 }
0x1002   : > { %v3332_v44 = vpop.f32.mrb[18].mxu0 }
0x1003   : > { %v2605_v0 = vadd.f32 %v3332_v44, %v2812_v41  ;;  %v2599_v1 = vpop.f32.mrb[19].mxu0 }
0x1004   : > { %v2600_v43 = vadd.f32 %v2812_v41, %v2599_v1 }
0x1005   : > { %v2609_v42 = vadd.f32 %v2605_v0, %v4433_v59 }
0x1006   : > { %v2608_v45 = vadd.f32 %v2600_v43, %v4431_v58 }
0x1007   : > { %2616 = vadd.xlane.f32.xlu1 %v2609_v42  ;;  %v2621_v46 = vmul.f32 %v2609_v42, %v2609_v42 }
0x1008   : > { %2614 = vadd.xlane.f32.xlu0 %v2608_v45  ;;  %v2620_v47 = vmul.f32 %v2608_v45, %v2608_v45 }
0x100b   : > { %2624 = vadd.xlane.f32.xlu1 %v2621_v46 }
0x100c   : > { %2622 = vadd.xlane.f32.xlu0 %v2620_v47 }
0x1094   : > { %v2617_v48 = vpop.xlane.xlu1 %2616 }
0x1095   : > { %v2619_v50 = vmul.f32 0.03125, %v2617_v48  ;;  %v2615_v52 = vpop.xlane.xlu0 %2614 }
0x1096   : > { %v2618_v53 = vmul.f32 0.03125, %v2615_v52 }
0x1097   : > { %v2629_v49 = vmul.f32 %v2619_v50, %v2619_v50  ;;  %v2633_v62 = vsub.f32 %v2609_v42, %v2619_v50 }
0x1098   : > { %v2625_v39 = vpop.xlane.xlu1 %2624  ;;  %v2628_v57 = vmul.f32 %v2618_v53, %v2618_v53  ;;  %v2632_v63 = vsub.f32 %v2608_v45, %v2618_v53 }
0x1099   : > { %v2627_v56 = vmul.f32 0.03125, %v2625_v39  ;;  %v2623_v51 = vpop.xlane.xlu0 %2622 }
0x109a   : > { %v2626_v60 = vmul.f32 0.03125, %v2623_v51 }
0x109b   : > { %v2631_v59 = vsub.f32 %v2627_v56, %v2629_v49 }
0x109c   : > { %v2630_v37 = vsub.f32 %v2626_v60, %v2628_v57 }
0x109d   : > { %v2635_v58 = vadd.f32 1e-12, %v2631_v59 }
0x109e   : > { %v2634_v61 = vadd.f32 1e-12, %v2630_v37 }
0x109f   : > { %3789 = vrsqrt.f32 %v2635_v58 }
0x10a0   : > { %3791 = vrsqrt.f32 %v2634_v61 }
0x10a9   : > { %v3790_v38 = vpop.eup %3789 }
0x10aa   : > { %v3792_v3 = vpop.eup %3791  ;;  %v2639_v4 = vmul.f32 %v3790_v38, %v2633_v62 }
0x10ab   : > { %v2638_v6 = vmul.f32 %v3792_v3, %v2632_v63 }
0x10ac   : > { %v2647_v8 = vmul.f32 %v2815_v2, %v2639_v4 }
0x10ad   : > { %v2646_v9 = vmul.f32 %v2815_v2, %v2638_v6 }
0x10ae   : > { %v2655_v10 = vadd.f32 %v2816_v5, %v2647_v8 }
0x10af   : > { %v2654_v18 = vadd.f32 %v2816_v5, %v2646_v9 }
0x10b0   : > { %2657 = vst [vmem:[%s606_s18 + $0x8] sm:$0xff] %v2655_v10 }
0x10b1   : > { %2656 = vst [vmem:[%s606_s18] sm:$0xff] %v2654_v18 }
0x10b2 PF: > { %s4503_s1 = sld [smem:[#allocation9_spill]] }
0x10b8   : > { %s29_s24 = sadd.s32 1, %s4503_s1  }
0x10b9   : > { %p26_p5 = scmp.ge.s32.totalorder %s29_s24, 4  }
0x10bb   :  { %28 = sbr.rel (!%p26_p5) target bundleno = 8 (0x8), region = 146 }
0x10c2   :  { %2679 = vsyncpa [#allocation3], 1 }
0x10c3   :  { %2681 = vsyncpa [#allocation3 + $0x1], 1 }
0x10c4   :  { %2682 = vsyncpa [#allocation5], 1 }

</bundles_post_ra>
